<compile_context>
chip_gen: v7x
topology: tpu7x:2x2x1
jax: 0.10.0
libtpu: 0.0.40
codegen_flags: <defaults>
</compile_context>

<pallas_src>
import functools
import math

import jax
import jax.numpy as jnp
from jax.experimental import pallas as pl
from jax.experimental.pallas import tpu as pltpu


# ------------------------------- helpers ------------------------------------

def _round_up(x, m):
    return (x + m - 1) // m * m


def _pad2d_to_128(w):
    """Zero-pad a 2-D matrix so both dims are multiples of 128 (done once)."""
    k, n = w.shape
    kp, np_ = _round_up(k, 128), _round_up(n, 128)
    if (kp, np_) != (k, n):
        w = jnp.pad(w, ((0, kp - k), (0, np_ - n)))
    return w


def _pad_bias_row(b):
    n = b.shape[0]
    np_ = _round_up(n, 128)
    b = b.reshape(1, n)
    if np_ != n:
        b = jnp.pad(b, ((0, 0), (0, np_ - n)))
    return b


def _pack_gate_weight(w, in_pad, hp):
    """w: [4H, in_dim] (PyTorch gate-stacked rows, order i, f, g, o).

    Returns [in_pad, 4*hp]: transposed, each gate's columns zero-padded H->hp
    so every gate block starts at a lane-aligned offset g*hp.
    """
    four_h, in_dim = w.shape
    h = four_h // 4
    wt = w.T                                                    # [in_dim, 4H]
    cols = [jnp.pad(wt[:, g * h:(g + 1) * h], ((0, 0), (0, hp - h)))
            for g in range(4)]
    out = jnp.concatenate(cols, axis=1)                         # [in_dim, 4hp]
    if in_pad != in_dim:
        out = jnp.pad(out, ((0, in_pad - in_dim), (0, 0)))
    return out


def _pack_gate_bias(b, hp):
    h = b.shape[0] // 4
    segs = [jnp.pad(b[g * h:(g + 1) * h], (0, hp - h)) for g in range(4)]
    return jnp.concatenate(segs).reshape(1, 4 * hp)


# ---------------------- matmul with fused bias epilogue ----------------------

def _matmul_bias_kernel(a_ref, b_ref, bias_ref, o_ref, acc_ref):
    @pl.when(pl.program_id(2) == 0)
    def _():
        acc_ref[...] = jnp.zeros_like(acc_ref)

    acc_ref[...] += jnp.dot(a_ref[...], b_ref[...],
                            preferred_element_type=jnp.float32)

    # Store (with the bias folded in) exactly once, after the last K step.
    @pl.when(pl.program_id(2) == pl.num_programs(2) - 1)
    def _():
        o_ref[...] = (acc_ref[...] + bias_ref[...]).astype(o_ref.dtype)


@functools.lru_cache(maxsize=None)
def _build_matmul_bias(Mp, Kp, Np, tm, tk, tn):
    return pl.pallas_call(
        _matmul_bias_kernel,
        out_shape=jax.ShapeDtypeStruct((Mp, Np), jnp.float32),
        grid_spec=pltpu.PrefetchScalarGridSpec(
            num_scalar_prefetch=0,
            grid=(Mp // tm, Np // tn, Kp // tk),
            in_specs=[pl.BlockSpec((tm, tk), lambda i, j, k: (i, k)),
                      pl.BlockSpec((tk, tn), lambda i, j, k: (k, j)),
                      pl.BlockSpec((1, tn), lambda i, j, k: (0, j))],
            out_specs=pl.BlockSpec((tm, tn), lambda i, j, k: (i, j)),
            scratch_shapes=[pltpu.VMEM((tm, tn), jnp.float32)]),
        compiler_params=pltpu.CompilerParams(
            dimension_semantics=("parallel", "parallel", "arbitrary"),
            vmem_limit_bytes=48 * 1024 * 1024),
    )


def matmul_bias(a, w_padded, bias_padded, n_out):
    """a: [M, K] @ w_padded: [Kp, Np] (pre-padded) + bias_padded: [1, Np].

    Returns [M, n_out] in float32.
    """
    M, K = a.shape
    Kp, Np = w_padded.shape
    tm = min(256, _round_up(M, 8))
    tk = next(c for c in (512, 384, 256, 128) if Kp % c == 0)
    tn = 256 if Np % 256 == 0 else 128
    Mp = _round_up(M, tm)
    a_p = a
    if (Mp, Kp) != (M, K):
        a_p = jnp.pad(a, ((0, Mp - M), (0, Kp - K)))
    out = _build_matmul_bias(Mp, Kp, Np, tm, tk, tn)(a_p, w_padded, bias_padded)
    return out[:M, :n_out]


# ------------------------------ LSTM recurrence ------------------------------

def _sigmoid(x):
    return 1.0 / (1.0 + jnp.exp(-x))


def _lstm_step_kernel(xg_ref, whh_ref, h_out_ref, h_scr, c_scr, *, hp):
    t = pl.program_id(0)

    @pl.when(t == 0)
    def _():
        h_scr[...] = jnp.zeros_like(h_scr)
        c_scr[...] = jnp.zeros_like(c_scr)

    # gates = x_t @ W_ih^T + b (precomputed) + h_{t-1} @ W_hh^T   (MXU)
    gates = xg_ref[0, :, :] + jnp.dot(h_scr[...], whh_ref[...],
                                      preferred_element_type=jnp.float32)
    i_g = _sigmoid(gates[:, 0 * hp:1 * hp])
    f_g = _sigmoid(gates[:, 1 * hp:2 * hp])
    g_g = jnp.tanh(gates[:, 2 * hp:3 * hp])
    o_g = _sigmoid(gates[:, 3 * hp:4 * hp])

    c_new = f_g * c_scr[...] + i_g * g_g
    h_new = o_g * jnp.tanh(c_new)

    c_scr[...] = c_new
    h_scr[...] = h_new
    h_out_ref[0, :, :] = h_new


@functools.lru_cache(maxsize=None)
def _build_lstm(T, Bp, Hp):
    return pl.pallas_call(
        functools.partial(_lstm_step_kernel, hp=Hp),
        out_shape=jax.ShapeDtypeStruct((T, Bp, Hp), jnp.float32),
        grid_spec=pltpu.PrefetchScalarGridSpec(
            num_scalar_prefetch=0,
            grid=(T,),
            in_specs=[pl.BlockSpec((1, Bp, 4 * Hp), lambda t: (t, 0, 0)),
                      pl.BlockSpec((Hp, 4 * Hp), lambda t: (0, 0))],
            out_specs=pl.BlockSpec((1, Bp, Hp), lambda t: (t, 0, 0)),
            scratch_shapes=[pltpu.VMEM((Bp, Hp), jnp.float32),   # h state
                            pltpu.VMEM((Bp, Hp), jnp.float32)]), # c state
        compiler_params=pltpu.CompilerParams(
            dimension_semantics=("arbitrary",),
            vmem_limit_bytes=48 * 1024 * 1024),
    )


def lstm_forward(xg_time_major, w_hh_t):
    """xg_time_major: [T, Bp, 4*Hp] padded-gate x-projections; w_hh_t: [Hp, 4*Hp]."""
    T, Bp, H4p = xg_time_major.shape
    Hp = H4p // 4
    return _build_lstm(T, Bp, Hp)(xg_time_major, w_hh_t)        # [T, Bp, Hp]


# ---------------------- embedding gather (scalar prefetch) -------------------

_GATHER_ROWS = 8


def _embed_gather_kernel(ids_ref, table_ref, o_ref):
    base = pl.program_id(0) * _GATHER_ROWS
    for j in range(_GATHER_ROWS):
        row = ids_ref[base + j]
        o_ref[pl.ds(j, 1)] = table_ref[pl.ds(row, 1)]


@functools.lru_cache(maxsize=None)
def _build_embed_gather(n_tok, V, E):
    return pl.pallas_call(
        _embed_gather_kernel,
        out_shape=jax.ShapeDtypeStruct((n_tok, 1, E), jnp.float32),
        grid_spec=pltpu.PrefetchScalarGridSpec(
            num_scalar_prefetch=1,
            grid=(n_tok // _GATHER_ROWS,),
            in_specs=[pl.BlockSpec((V, 1, E), lambda i, ids: (0, 0, 0))],
            out_specs=pl.BlockSpec((_GATHER_ROWS, 1, E),
                                   lambda i, ids: (i, 0, 0))),
        compiler_params=pltpu.CompilerParams(
            dimension_semantics=("arbitrary",)),
    )


def embedding_lookup(ids, table):
    """ids: int [N]; table: f32 [V, E] -> f32 [N, E] via Pallas row gather."""
    (n,) = ids.shape
    V, E = table.shape
    n_pad = _round_up(n, _GATHER_ROWS)
    ids_p = jnp.pad(ids.astype(jnp.int32), (0, n_pad - n))
    out = _build_embed_gather(n_pad, V, E)(ids_p, table.reshape(V, 1, E))
    return out[:n, 0, :]


# ------------------------------- parameters ----------------------------------

def build_decoder_params(key, embed_size, hidden_size, vocab_size):
    E, H, V = embed_size, hidden_size, vocab_size
    Hp = _round_up(H, 128)
    Ep = _round_up(E, 128)
    k_emb, k_wih, k_whh, k_bih, k_bhh, k_wo, k_bo = jax.random.split(key, 7)

    # nn.Embedding default init: N(0, 1)
    table = jax.random.normal(k_emb, (V, E), jnp.float32)

    # nn.LSTM default init: U(-1/sqrt(H), 1/sqrt(H)); gate order (i, f, g, o)
    k = 1.0 / math.sqrt(H)
    w_ih = jax.random.uniform(k_wih, (4 * H, E), jnp.float32, -k, k)
    w_hh = jax.random.uniform(k_whh, (4 * H, H), jnp.float32, -k, k)
    b_ih = jax.random.uniform(k_bih, (4 * H,), jnp.float32, -k, k)
    b_hh = jax.random.uniform(k_bhh, (4 * H,), jnp.float32, -k, k)

    # nn.Linear default init: U(-1/sqrt(H), 1/sqrt(H))
    w_out = jax.random.uniform(k_wo, (V, H), jnp.float32, -k, k)
    b_out = jax.random.uniform(k_bo, (V,), jnp.float32, -k, k)

    # Kernel-side params: pre-transposed, per-gate lane-aligned, zero-padded
    # to multiples of 128 ONCE (hoisted out of the forward pass).
    kernel_params = {
        "embed_table": table,                              # [V, E]
        "w_ih_t": _pack_gate_weight(w_ih, Ep, Hp),         # [Ep, 4*Hp]
        "b_gates": _pack_gate_bias(b_ih + b_hh, Hp),       # [1, 4*Hp]
        "w_hh_t": _pack_gate_weight(w_hh, Hp, Hp),         # [Hp, 4*Hp]
        "w_out_t": _pad2d_to_128(w_out.T),                 # [Hp, Vp]
        "b_out": _pad_bias_row(b_out),                     # [1, Vp]
    }
    # Raw params kept only for the pure-JAX reference check.
    ref_params = {
        "embed_table": table, "w_ih": w_ih, "w_hh": w_hh,
        "b": b_ih + b_hh, "w_out": w_out, "b_out": b_out,
    }
    return kernel_params, ref_params


# ------------------------------- forward pass --------------------------------

def decoder_rnn_forward(params, features, captions):
    """DecoderRNN.forward(features, captions) -> logits [B, T, V]."""
    table = params["embed_table"]
    V, E = table.shape
    Hp = params["w_hh_t"].shape[0]
    B = features.shape[0]
    Bp = _round_up(B, 8)

    cap = captions[:, :-1]                                    # [B, T-1]
    T = cap.shape[1] + 1

    emb = embedding_lookup(cap.reshape(-1), table)            # [B*(T-1), E]
    emb = emb.reshape(B, T - 1, E)
    inputs = jnp.concatenate(
        [features.astype(jnp.float32)[:, None, :], emb], axis=1)  # [B, T, E]
    if Bp != B:   # sublane-align the batch once; pad rows stay zero throughout
        inputs = jnp.pad(inputs, ((0, Bp - B), (0, 0), (0, 0)))

    # Single layout change to time-major; everything downstream is lane-dense.
    x_tm = inputs.transpose(1, 0, 2).reshape(T * Bp, E)       # [T*Bp, E]

    # Input projection for all timesteps at once; bias fused into the epilogue.
    xg = matmul_bias(x_tm, params["w_ih_t"], params["b_gates"], 4 * Hp)
    xg = xg.reshape(T, Bp, 4 * Hp)

    hiddens = lstm_forward(xg, params["w_hh_t"])              # [T, Bp, Hp]

    # Drop batch padding before the (expensive) vocab projection; keep the
    # zero-padded hidden width Hp — w_out_t's extra rows are zero, so no
    # re-slice / re-pad of the activations is needed.
    h2d = hiddens[:, :B, :].transpose(1, 0, 2).reshape(B * T, Hp)
    logits = matmul_bias(h2d, params["w_out_t"], params["b_out"], V)
    return logits.reshape(B, T, V)


# --------------------------- pure-JAX reference -------------------------------

def _reference_forward(ref_params, features, captions):
    table = ref_params["embed_table"]
    V, E = table.shape
    H = ref_params["w_hh"].shape[1]
    w_ih_t = ref_params["w_ih"].T                             # [E, 4H]
    w_hh_t = ref_params["w_hh"].T                             # [H, 4H]
    b_g = ref_params["b"]
    w_out_t = ref_params["w_out"].T                           # [H, V]
    b_out = ref_params["b_out"]
    hp = jax.lax.Precision.HIGHEST

    cap = captions[:, :-1]
    emb = table[cap]                                          # [B, T-1, E]
    x = jnp.concatenate([features[:, None, :], emb], axis=1)  # [B, T, E]
    B, T, _ = x.shape

    def step(carry, x_t):
        h, c = carry
        gates = (jnp.dot(x_t, w_ih_t, precision=hp)
                 + jnp.dot(h, w_hh_t, precision=hp) + b_g)
        i = jax.nn.sigmoid(gates[:, 0 * H:1 * H])
        f = jax.nn.sigmoid(gates[:, 1 * H:2 * H])
        g = jnp.tanh(gates[:, 2 * H:3 * H])
        o = jax.nn.sigmoid(gates[:, 3 * H:4 * H])
        c = f * c + i * g
        h = o * jnp.tanh(c)
        return (h, c), h

    init = (jnp.zeros((B, H), jnp.float32), jnp.zeros((B, H), jnp.float32))
    _, hs = jax.lax.scan(step, init, x.transpose(1, 0, 2))    # [T, B, H]
    hiddens = hs.transpose(1, 0, 2).reshape(B * T, H)
    logits = jnp.dot(hiddens, w_out_t, precision=hp) + b_out
    return logits.reshape(B, T, V)


# ----------------------------------- main -------------------------------------

if __name__ == "__main__":
    batch, seq_len = 2, 8
    embed_size, hidden_size, vocab_size = 32, 32, 128

    key = jax.random.PRNGKey(0)
    k_params, k_feat, k_cap = jax.random.split(key, 3)
    params, ref_params = build_decoder_params(
        k_params, embed_size, hidden_size, vocab_size)
    features = jax.random.normal(k_feat, (batch, embed_size), jnp.float32)
    captions = jax.random.randint(k_cap, (batch, seq_len), 0, vocab_size,
                                  dtype=jnp.int32)

    fwd = jax.jit(decoder_rnn_forward)
    out = jax.block_until_ready(fwd(params, features, captions))

    assert out.shape == (batch, seq_len, vocab_size), out.shape
    assert bool(jnp.all(jnp.isfinite(out)))

    ref = _reference_forward(ref_params, features, captions)
    assert bool(jnp.allclose(out, ref, atol=2e-2, rtol=2e-2)), (
        float(jnp.max(jnp.abs(out - ref))))

    print("KERNEL_OK")
</pallas_src>

<mosaic_0001>
module attributes {stable_mosaic.version = 11 : i64} {
  func.func @_embed_gather_kernel(%arg0: i32, %arg1: memref<16xi32, #tpu.memory_space<smem>>, %arg2: memref<128x1x32xf32, #tpu.memory_space<vmem>>, %arg3: memref<8x1x32xf32, #tpu.memory_space<vmem>>) attributes {dimension_semantics = [#tpu.dimension_semantics<arbitrary>], iteration_bounds = array<i64: 2>, scalar_prefetch = 1 : i64, scratch_operands = 0 : i64, tpu.core_type = #tpu.core_type<tc>, window_params = [{pipeline_mode = #tpu.pipeline_mode<synchronous>, transform_indices = @transform_0, window_bounds = array<i64: 128, 1, 32>}, {transform_indices = @transform_1, window_bounds = array<i64: 8, 1, 32>}]} {
    %c8_i32 = arith.constant 8 : i32
    %0 = arith.muli %arg0, %c8_i32 : i32
    %c0_i32 = arith.constant 0 : i32
    %1 = arith.addi %0, %c0_i32 : i32
    %2 = arith.index_cast %1 : i32 to index
    %3 = memref.load %arg1[%2] : memref<16xi32, #tpu.memory_space<smem>>
    %4 = arith.index_cast %3 : i32 to index
    %c0 = arith.constant 0 : index
    %c0_0 = arith.constant 0 : index
    %5 = vector.load %arg2[%4, %c0, %c0_0] : memref<128x1x32xf32, #tpu.memory_space<vmem>>, vector<1x1x32xf32>
    %c0_1 = arith.constant 0 : index
    %c0_2 = arith.constant 0 : index
    %c0_3 = arith.constant 0 : index
    %6 = vector.load %arg3[%c0_1, %c0_2, %c0_3] : memref<8x1x32xf32, #tpu.memory_space<vmem>>, vector<1x1x32xf32>
    tpu.vector_store %arg3[%c0_1, %c0_2, %c0_3], %5 {strides = array<i32>} : memref<8x1x32xf32, #tpu.memory_space<vmem>>, vector<1x1x32xf32>,
    %c1_i32 = arith.constant 1 : i32
    %7 = arith.addi %0, %c1_i32 : i32
    %8 = arith.index_cast %7 : i32 to index
    %9 = memref.load %arg1[%8] : memref<16xi32, #tpu.memory_space<smem>>
    %10 = arith.index_cast %9 : i32 to index
    %c0_4 = arith.constant 0 : index
    %c0_5 = arith.constant 0 : index
    %11 = vector.load %arg2[%10, %c0_4, %c0_5] : memref<128x1x32xf32, #tpu.memory_space<vmem>>, vector<1x1x32xf32>
    %c1 = arith.constant 1 : index
    %c0_6 = arith.constant 0 : index
    %c0_7 = arith.constant 0 : index
    %12 = vector.load %arg3[%c1, %c0_6, %c0_7] : memref<8x1x32xf32, #tpu.memory_space<vmem>>, vector<1x1x32xf32>
    tpu.vector_store %arg3[%c1, %c0_6, %c0_7], %11 {strides = array<i32>} : memref<8x1x32xf32, #tpu.memory_space<vmem>>, vector<1x1x32xf32>,
    %c2_i32 = arith.constant 2 : i32
    %13 = arith.addi %0, %c2_i32 : i32
    %14 = arith.index_cast %13 : i32 to index
    %15 = memref.load %arg1[%14] : memref<16xi32, #tpu.memory_space<smem>>
    %16 = arith.index_cast %15 : i32 to index
    %c0_8 = arith.constant 0 : index
    %c0_9 = arith.constant 0 : index
    %17 = vector.load %arg2[%16, %c0_8, %c0_9] : memref<128x1x32xf32, #tpu.memory_space<vmem>>, vector<1x1x32xf32>
    %c2 = arith.constant 2 : index
    %c0_10 = arith.constant 0 : index
    %c0_11 = arith.constant 0 : index
    %18 = vector.load %arg3[%c2, %c0_10, %c0_11] : memref<8x1x32xf32, #tpu.memory_space<vmem>>, vector<1x1x32xf32>
    tpu.vector_store %arg3[%c2, %c0_10, %c0_11], %17 {strides = array<i32>} : memref<8x1x32xf32, #tpu.memory_space<vmem>>, vector<1x1x32xf32>,
    %c3_i32 = arith.constant 3 : i32
    %19 = arith.addi %0, %c3_i32 : i32
    %20 = arith.index_cast %19 : i32 to index
    %21 = memref.load %arg1[%20] : memref<16xi32, #tpu.memory_space<smem>>
    %22 = arith.index_cast %21 : i32 to index
    %c0_12 = arith.constant 0 : index
    %c0_13 = arith.constant 0 : index
    %23 = vector.load %arg2[%22, %c0_12, %c0_13] : memref<128x1x32xf32, #tpu.memory_space<vmem>>, vector<1x1x32xf32>
    %c3 = arith.constant 3 : index
    %c0_14 = arith.constant 0 : index
    %c0_15 = arith.constant 0 : index
    %24 = vector.load %arg3[%c3, %c0_14, %c0_15] : memref<8x1x32xf32, #tpu.memory_space<vmem>>, vector<1x1x32xf32>
    tpu.vector_store %arg3[%c3, %c0_14, %c0_15], %23 {strides = array<i32>} : memref<8x1x32xf32, #tpu.memory_space<vmem>>, vector<1x1x32xf32>,
    %c4_i32 = arith.constant 4 : i32
    %25 = arith.addi %0, %c4_i32 : i32
    %26 = arith.index_cast %25 : i32 to index
    %27 = memref.load %arg1[%26] : memref<16xi32, #tpu.memory_space<smem>>
    %28 = arith.index_cast %27 : i32 to index
    %c0_16 = arith.constant 0 : index
    %c0_17 = arith.constant 0 : index
    %29 = vector.load %arg2[%28, %c0_16, %c0_17] : memref<128x1x32xf32, #tpu.memory_space<vmem>>, vector<1x1x32xf32>
    %c4 = arith.constant 4 : index
    %c0_18 = arith.constant 0 : index
    %c0_19 = arith.constant 0 : index
    %30 = vector.load %arg3[%c4, %c0_18, %c0_19] : memref<8x1x32xf32, #tpu.memory_space<vmem>>, vector<1x1x32xf32>
    tpu.vector_store %arg3[%c4, %c0_18, %c0_19], %29 {strides = array<i32>} : memref<8x1x32xf32, #tpu.memory_space<vmem>>, vector<1x1x32xf32>,
    %c5_i32 = arith.constant 5 : i32
    %31 = arith.addi %0, %c5_i32 : i32
    %32 = arith.index_cast %31 : i32 to index
    %33 = memref.load %arg1[%32] : memref<16xi32, #tpu.memory_space<smem>>
    %34 = arith.index_cast %33 : i32 to index
    %c0_20 = arith.constant 0 : index
    %c0_21 = arith.constant 0 : index
    %35 = vector.load %arg2[%34, %c0_20, %c0_21] : memref<128x1x32xf32, #tpu.memory_space<vmem>>, vector<1x1x32xf32>
    %c5 = arith.constant 5 : index
    %c0_22 = arith.constant 0 : index
    %c0_23 = arith.constant 0 : index
    %36 = vector.load %arg3[%c5, %c0_22, %c0_23] : memref<8x1x32xf32, #tpu.memory_space<vmem>>, vector<1x1x32xf32>
    tpu.vector_store %arg3[%c5, %c0_22, %c0_23], %35 {strides = array<i32>} : memref<8x1x32xf32, #tpu.memory_space<vmem>>, vector<1x1x32xf32>,
    %c6_i32 = arith.constant 6 : i32
    %37 = arith.addi %0, %c6_i32 : i32
    %38 = arith.index_cast %37 : i32 to index
    %39 = memref.load %arg1[%38] : memref<16xi32, #tpu.memory_space<smem>>
    %40 = arith.index_cast %39 : i32 to index
    %c0_24 = arith.constant 0 : index
    %c0_25 = arith.constant 0 : index
    %41 = vector.load %arg2[%40, %c0_24, %c0_25] : memref<128x1x32xf32, #tpu.memory_space<vmem>>, vector<1x1x32xf32>
    %c6 = arith.constant 6 : index
    %c0_26 = arith.constant 0 : index
    %c0_27 = arith.constant 0 : index
    %42 = vector.load %arg3[%c6, %c0_26, %c0_27] : memref<8x1x32xf32, #tpu.memory_space<vmem>>, vector<1x1x32xf32>
    tpu.vector_store %arg3[%c6, %c0_26, %c0_27], %41 {strides = array<i32>} : memref<8x1x32xf32, #tpu.memory_space<vmem>>, vector<1x1x32xf32>,
    %c7_i32 = arith.constant 7 : i32
    %43 = arith.addi %0, %c7_i32 : i32
    %44 = arith.index_cast %43 : i32 to index
    %45 = memref.load %arg1[%44] : memref<16xi32, #tpu.memory_space<smem>>
    %46 = arith.index_cast %45 : i32 to index
    %c0_28 = arith.constant 0 : index
    %c0_29 = arith.constant 0 : index
    %47 = vector.load %arg2[%46, %c0_28, %c0_29] : memref<128x1x32xf32, #tpu.memory_space<vmem>>, vector<1x1x32xf32>
    %c7 = arith.constant 7 : index
    %c0_30 = arith.constant 0 : index
    %c0_31 = arith.constant 0 : index
    %48 = vector.load %arg3[%c7, %c0_30, %c0_31] : memref<8x1x32xf32, #tpu.memory_space<vmem>>, vector<1x1x32xf32>
    tpu.vector_store %arg3[%c7, %c0_30, %c0_31], %47 {strides = array<i32>} : memref<8x1x32xf32, #tpu.memory_space<vmem>>, vector<1x1x32xf32>,
    return
  }
  func.func @transform_0(%arg0: i32, %arg1: memref<16xi32, #tpu.memory_space<smem>>) -> (i32, i32, i32) {
    %c0_i32 = arith.constant 0 : i32
    %c0_i32_0 = arith.constant 0 : i32
    %c0_i32_1 = arith.constant 0 : i32
    %c0_i32_2 = arith.constant 0 : i32
    return %c0_i32, %c0_i32_0, %c0_i32_1 : i32, i32, i32
  }
  func.func @transform_1(%arg0: i32, %arg1: memref<16xi32, #tpu.memory_space<smem>>) -> (i32, i32, i32) {
    %c0_i32 = arith.constant 0 : i32
    %c0_i32_0 = arith.constant 0 : i32
    %c0_i32_1 = arith.constant 0 : i32
    return %arg0, %c0_i32, %c0_i32_0 : i32, i32, i32
  }
}

module attributes {stable_mosaic.version = 11 : i64} {
  func.func @_matmul_bias_kernel(%arg0: i32, %arg1: i32, %arg2: i32, %arg3: memref<64x128xf32, #tpu.memory_space<vmem>>, %arg4: memref<128x256xf32, #tpu.memory_space<vmem>>, %arg5: memref<1x256xf32, #tpu.memory_space<vmem>>, %arg6: memref<64x256xf32, #tpu.memory_space<vmem>>, %arg7: memref<64x256xf32, #tpu.memory_space<vmem>>) attributes {dimension_semantics = [#tpu.dimension_semantics<parallel>, #tpu.dimension_semantics<parallel>, #tpu.dimension_semantics<arbitrary>], iteration_bounds = array<i64: 1, 2, 1>, scalar_prefetch = 0 : i64, scratch_operands = 1 : i64, tpu.core_type = #tpu.core_type<tc>, window_params = [{transform_indices = @transform_0, window_bounds = array<i64: 64, 128>}, {transform_indices = @transform_1, window_bounds = array<i64: 128, 256>}, {transform_indices = @transform_2, window_bounds = array<i64: 1, 256>}, {transform_indices = @transform_3, window_bounds = array<i64: 64, 256>}]} {
    %c0_i32 = arith.constant 0 : i32
    %0 = arith.cmpi eq, %arg2, %c0_i32 : i32
    %1 = arith.extui %0 : i1 to i32
    %c0_i32_0 = arith.constant 0 : i32
    %2 = arith.cmpi ne, %1, %c0_i32_0 : i32
    scf.if %2 {
      %cst_10 = arith.constant 0.000000e+00 : f32
      %12 = vector.broadcast %cst_10 : f32 to vector<64x256xf32>
      %c0_11 = arith.constant 0 : index
      %c0_12 = arith.constant 0 : index
      %13 = vector.load %arg7[%c0_11, %c0_12] : memref<64x256xf32, #tpu.memory_space<vmem>>, vector<64x256xf32>
      tpu.vector_store %arg7[%c0_11, %c0_12], %12 {strides = array<i32>} : memref<64x256xf32, #tpu.memory_space<vmem>>, vector<64x256xf32>,
    } else {
    }
    %c0 = arith.constant 0 : index
    %c0_1 = arith.constant 0 : index
    %3 = vector.load %arg7[%c0, %c0_1] : memref<64x256xf32, #tpu.memory_space<vmem>>, vector<64x256xf32>
    %c0_2 = arith.constant 0 : index
    %c0_3 = arith.constant 0 : index
    %4 = vector.load %arg3[%c0_2, %c0_3] : memref<64x128xf32, #tpu.memory_space<vmem>>, vector<64x128xf32>
    %c0_4 = arith.constant 0 : index
    %c0_5 = arith.constant 0 : index
    %5 = vector.load %arg4[%c0_4, %c0_5] : memref<128x256xf32, #tpu.memory_space<vmem>>, vector<128x256xf32>
    %cst = arith.constant dense<0.000000e+00> : vector<64x256xf32>
    %6 = tpu.matmul %4, %5, %cst {dimension_numbers = #tpu.dot_dimension_numbers<[1], [0], [0], [1], [0, 0, 1, 1], [], []>} : vector<64x128xf32>, vector<128x256xf32>, vector<64x256xf32> -> vector<64x256xf32>
    %7 = arith.addf %3, %6 : vector<64x256xf32>
    %c0_6 = arith.constant 0 : index
    %c0_7 = arith.constant 0 : index
    %8 = vector.load %arg7[%c0_6, %c0_7] : memref<64x256xf32, #tpu.memory_space<vmem>>, vector<64x256xf32>
    tpu.vector_store %arg7[%c0_6, %c0_7], %7 {strides = array<i32>} : memref<64x256xf32, #tpu.memory_space<vmem>>, vector<64x256xf32>,
    %c0_i32_8 = arith.constant 0 : i32
    %9 = arith.cmpi eq, %arg2, %c0_i32_8 : i32
    %10 = arith.extui %9 : i1 to i32
    %c0_i32_9 = arith.constant 0 : i32
    %11 = arith.cmpi ne, %10, %c0_i32_9 : i32
    scf.if %11 {
      %c0_10 = arith.constant 0 : index
      %c0_11 = arith.constant 0 : index
      %12 = vector.load %arg7[%c0_10, %c0_11] : memref<64x256xf32, #tpu.memory_space<vmem>>, vector<64x256xf32>
      %c0_12 = arith.constant 0 : index
      %c0_13 = arith.constant 0 : index
      %13 = vector.load %arg5[%c0_12, %c0_13] : memref<1x256xf32, #tpu.memory_space<vmem>>, vector<1x256xf32>
      %14 = vector.broadcast %13 : vector<1x256xf32> to vector<64x256xf32>
      %15 = arith.addf %12, %14 : vector<64x256xf32>
      %c0_14 = arith.constant 0 : index
      %c0_15 = arith.constant 0 : index
      %16 = vector.load %arg6[%c0_14, %c0_15] : memref<64x256xf32, #tpu.memory_space<vmem>>, vector<64x256xf32>
      tpu.vector_store %arg6[%c0_14, %c0_15], %15 {strides = array<i32>} : memref<64x256xf32, #tpu.memory_space<vmem>>, vector<64x256xf32>,
    } else {
    }
    return
  }
  func.func @transform_0(%arg0: i32, %arg1: i32, %arg2: i32) -> (i32, i32) {
    %c0_i32 = arith.constant 0 : i32
    return %arg0, %arg2 : i32, i32
  }
  func.func @transform_1(%arg0: i32, %arg1: i32, %arg2: i32) -> (i32, i32) {
    %c0_i32 = arith.constant 0 : i32
    return %arg2, %arg1 : i32, i32
  }
  func.func @transform_2(%arg0: i32, %arg1: i32, %arg2: i32) -> (i32, i32) {
    %c0_i32 = arith.constant 0 : i32
    %c0_i32_0 = arith.constant 0 : i32
    return %c0_i32, %arg1 : i32, i32
  }
  func.func @transform_3(%arg0: i32, %arg1: i32, %arg2: i32) -> (i32, i32) {
    %c0_i32 = arith.constant 0 : i32
    return %arg0, %arg1 : i32, i32
  }
}

module attributes {stable_mosaic.version = 11 : i64} {
  func.func @_lstm_step_kernel(%arg0: i32, %arg1: memref<1x8x512xf32, #tpu.memory_space<vmem>>, %arg2: memref<128x512xf32, #tpu.memory_space<vmem>>, %arg3: memref<1x8x128xf32, #tpu.memory_space<vmem>>, %arg4: memref<8x128xf32, #tpu.memory_space<vmem>>, %arg5: memref<8x128xf32, #tpu.memory_space<vmem>>) attributes {dimension_semantics = [#tpu.dimension_semantics<arbitrary>], iteration_bounds = array<i64: 8>, scalar_prefetch = 0 : i64, scratch_operands = 2 : i64, tpu.core_type = #tpu.core_type<tc>, window_params = [{transform_indices = @transform_0, window_bounds = array<i64: 1, 8, 512>}, {pipeline_mode = #tpu.pipeline_mode<synchronous>, transform_indices = @transform_1, window_bounds = array<i64: 128, 512>}, {transform_indices = @transform_2, window_bounds = array<i64: 1, 8, 128>}]} {
    %c0_i32 = arith.constant 0 : i32
    %0 = arith.cmpi eq, %arg0, %c0_i32 : i32
    %1 = arith.extui %0 : i1 to i32
    %c0_i32_0 = arith.constant 0 : i32
    %2 = arith.cmpi ne, %1, %c0_i32_0 : i32
    scf.if %2 {
      %cst_25 = arith.constant 0.000000e+00 : f32
      %46 = vector.broadcast %cst_25 : f32 to vector<8x128xf32>
      %c0_26 = arith.constant 0 : index
      %c0_27 = arith.constant 0 : index
      %47 = vector.load %arg4[%c0_26, %c0_27] : memref<8x128xf32, #tpu.memory_space<vmem>>, vector<8x128xf32>
      tpu.vector_store %arg4[%c0_26, %c0_27], %46 {strides = array<i32>} : memref<8x128xf32, #tpu.memory_space<vmem>>, vector<8x128xf32>,
      %cst_28 = arith.constant 0.000000e+00 : f32
      %48 = vector.broadcast %cst_28 : f32 to vector<8x128xf32>
      %c0_29 = arith.constant 0 : index
      %c0_30 = arith.constant 0 : index
      %49 = vector.load %arg5[%c0_29, %c0_30] : memref<8x128xf32, #tpu.memory_space<vmem>>, vector<8x128xf32>
      tpu.vector_store %arg5[%c0_29, %c0_30], %48 {strides = array<i32>} : memref<8x128xf32, #tpu.memory_space<vmem>>, vector<8x128xf32>,
    } else {
    }
    %c0 = arith.constant 0 : index
    %c0_1 = arith.constant 0 : index
    %c0_2 = arith.constant 0 : index
    %3 = vector.load %arg1[%c0, %c0_1, %c0_2] : memref<1x8x512xf32, #tpu.memory_space<vmem>>, vector<1x8x512xf32>
    %4 = vector.shape_cast %3 : vector<1x8x512xf32> to vector<8x512xf32>
    %c0_3 = arith.constant 0 : index
    %c0_4 = arith.constant 0 : index
    %5 = vector.load %arg4[%c0_3, %c0_4] : memref<8x128xf32, #tpu.memory_space<vmem>>, vector<8x128xf32>
    %c0_5 = arith.constant 0 : index
    %c0_6 = arith.constant 0 : index
    %6 = vector.load %arg2[%c0_5, %c0_6] : memref<128x512xf32, #tpu.memory_space<vmem>>, vector<128x512xf32>
    %cst = arith.constant dense<0.000000e+00> : vector<8x512xf32>
    %7 = tpu.matmul %5, %6, %cst {dimension_numbers = #tpu.dot_dimension_numbers<[1], [0], [0], [1], [0, 0, 1, 1], [], []>} : vector<8x128xf32>, vector<128x512xf32>, vector<8x512xf32> -> vector<8x512xf32>
    %8 = arith.addf %4, %7 : vector<8x512xf32>
    %9 = vector.extract_strided_slice %8 {offsets = [0, 0], sizes = [8, 128], strides = [1, 1]} : vector<8x512xf32> to vector<8x128xf32>
    %cst_7 = arith.constant 0.000000e+00 : f32
    %10 = vector.broadcast %cst_7 : f32 to vector<8x128xf32>
    %11 = arith.subf %10, %9 : vector<8x128xf32>
    %12 = math.exp %11 : vector<8x128xf32>
    %cst_8 = arith.constant 1.000000e+00 : f32
    %13 = vector.broadcast %cst_8 : f32 to vector<8x128xf32>
    %14 = arith.addf %13, %12 : vector<8x128xf32>
    %cst_9 = arith.constant 1.000000e+00 : f32
    %15 = vector.broadcast %cst_9 : f32 to vector<8x128xf32>
    %16 = arith.divf %15, %14 : vector<8x128xf32>
    %17 = vector.extract_strided_slice %8 {offsets = [0, 128], sizes = [8, 128], strides = [1, 1]} : vector<8x512xf32> to vector<8x128xf32>
    %cst_10 = arith.constant 0.000000e+00 : f32
    %18 = vector.broadcast %cst_10 : f32 to vector<8x128xf32>
    %19 = arith.subf %18, %17 : vector<8x128xf32>
    %20 = math.exp %19 : vector<8x128xf32>
    %cst_11 = arith.constant 1.000000e+00 : f32
    %21 = vector.broadcast %cst_11 : f32 to vector<8x128xf32>
    %22 = arith.addf %21, %20 : vector<8x128xf32>
    %cst_12 = arith.constant 1.000000e+00 : f32
    %23 = vector.broadcast %cst_12 : f32 to vector<8x128xf32>
    %24 = arith.divf %23, %22 : vector<8x128xf32>
    %25 = vector.extract_strided_slice %8 {offsets = [0, 256], sizes = [8, 128], strides = [1, 1]} : vector<8x512xf32> to vector<8x128xf32>
    %26 = math.tanh %25 : vector<8x128xf32>
    %27 = vector.extract_strided_slice %8 {offsets = [0, 384], sizes = [8, 128], strides = [1, 1]} : vector<8x512xf32> to vector<8x128xf32>
    %cst_13 = arith.constant 0.000000e+00 : f32
    %28 = vector.broadcast %cst_13 : f32 to vector<8x128xf32>
    %29 = arith.subf %28, %27 : vector<8x128xf32>
    %30 = math.exp %29 : vector<8x128xf32>
    %cst_14 = arith.constant 1.000000e+00 : f32
    %31 = vector.broadcast %cst_14 : f32 to vector<8x128xf32>
    %32 = arith.addf %31, %30 : vector<8x128xf32>
    %cst_15 = arith.constant 1.000000e+00 : f32
    %33 = vector.broadcast %cst_15 : f32 to vector<8x128xf32>
    %34 = arith.divf %33, %32 : vector<8x128xf32>
    %c0_16 = arith.constant 0 : index
    %c0_17 = arith.constant 0 : index
    %35 = vector.load %arg5[%c0_16, %c0_17] : memref<8x128xf32, #tpu.memory_space<vmem>>, vector<8x128xf32>
    %36 = arith.mulf %24, %35 : vector<8x128xf32>
    %37 = arith.mulf %16, %26 : vector<8x128xf32>
    %38 = arith.addf %36, %37 : vector<8x128xf32>
    %39 = math.tanh %38 : vector<8x128xf32>
    %40 = arith.mulf %34, %39 : vector<8x128xf32>
    %c0_18 = arith.constant 0 : index
    %c0_19 = arith.constant 0 : index
    %41 = vector.load %arg5[%c0_18, %c0_19] : memref<8x128xf32, #tpu.memory_space<vmem>>, vector<8x128xf32>
    tpu.vector_store %arg5[%c0_18, %c0_19], %38 {strides = array<i32>} : memref<8x128xf32, #tpu.memory_space<vmem>>, vector<8x128xf32>,
    %c0_20 = arith.constant 0 : index
    %c0_21 = arith.constant 0 : index
    %42 = vector.load %arg4[%c0_20, %c0_21] : memref<8x128xf32, #tpu.memory_space<vmem>>, vector<8x128xf32>
    tpu.vector_store %arg4[%c0_20, %c0_21], %40 {strides = array<i32>} : memref<8x128xf32, #tpu.memory_space<vmem>>, vector<8x128xf32>,
    %c0_22 = arith.constant 0 : index
    %c0_23 = arith.constant 0 : index
    %c0_24 = arith.constant 0 : index
    %43 = vector.load %arg3[%c0_22, %c0_23, %c0_24] : memref<1x8x128xf32, #tpu.memory_space<vmem>>, vector<1x8x128xf32>
    %44 = vector.shape_cast %43 : vector<1x8x128xf32> to vector<8x128xf32>
    %45 = vector.shape_cast %40 : vector<8x128xf32> to vector<1x8x128xf32>
    tpu.vector_store %arg3[%c0_22, %c0_23, %c0_24], %45 {strides = array<i32>} : memref<1x8x128xf32, #tpu.memory_space<vmem>>, vector<1x8x128xf32>,
    return
  }
  func.func @transform_0(%arg0: i32) -> (i32, i32, i32) {
    %c0_i32 = arith.constant 0 : i32
    %c0_i32_0 = arith.constant 0 : i32
    %c0_i32_1 = arith.constant 0 : i32
    return %arg0, %c0_i32, %c0_i32_0 : i32, i32, i32
  }
  func.func @transform_1(%arg0: i32) -> (i32, i32) {
    %c0_i32 = arith.constant 0 : i32
    %c0_i32_0 = arith.constant 0 : i32
    %c0_i32_1 = arith.constant 0 : i32
    return %c0_i32, %c0_i32_0 : i32, i32
  }
  func.func @transform_2(%arg0: i32) -> (i32, i32, i32) {
    %c0_i32 = arith.constant 0 : i32
    %c0_i32_0 = arith.constant 0 : i32
    %c0_i32_1 = arith.constant 0 : i32
    return %arg0, %c0_i32, %c0_i32_0 : i32, i32, i32
  }
}

module attributes {stable_mosaic.version = 11 : i64} {
  func.func @_matmul_bias_kernel(%arg0: i32, %arg1: i32, %arg2: i32, %arg3: memref<16x128xf32, #tpu.memory_space<vmem>>, %arg4: memref<128x128xf32, #tpu.memory_space<vmem>>, %arg5: memref<1x128xf32, #tpu.memory_space<vmem>>, %arg6: memref<16x128xf32, #tpu.memory_space<vmem>>, %arg7: memref<16x128xf32, #tpu.memory_space<vmem>>) attributes {dimension_semantics = [#tpu.dimension_semantics<parallel>, #tpu.dimension_semantics<parallel>, #tpu.dimension_semantics<arbitrary>], iteration_bounds = array<i64: 1, 1, 1>, scalar_prefetch = 0 : i64, scratch_operands = 1 : i64, tpu.core_type = #tpu.core_type<tc>, window_params = [{transform_indices = @transform_0, window_bounds = array<i64: 16, 128>}, {transform_indices = @transform_1, window_bounds = array<i64: 128, 128>}, {transform_indices = @transform_2, window_bounds = array<i64: 1, 128>}, {transform_indices = @transform_3, window_bounds = array<i64: 16, 128>}]} {
    %c0_i32 = arith.constant 0 : i32
    %0 = arith.cmpi eq, %arg2, %c0_i32 : i32
    %1 = arith.extui %0 : i1 to i32
    %c0_i32_0 = arith.constant 0 : i32
    %2 = arith.cmpi ne, %1, %c0_i32_0 : i32
    scf.if %2 {
      %cst_10 = arith.constant 0.000000e+00 : f32
      %12 = vector.broadcast %cst_10 : f32 to vector<16x128xf32>
      %c0_11 = arith.constant 0 : index
      %c0_12 = arith.constant 0 : index
      %13 = vector.load %arg7[%c0_11, %c0_12] : memref<16x128xf32, #tpu.memory_space<vmem>>, vector<16x128xf32>
      tpu.vector_store %arg7[%c0_11, %c0_12], %12 {strides = array<i32>} : memref<16x128xf32, #tpu.memory_space<vmem>>, vector<16x128xf32>,
    } else {
    }
    %c0 = arith.constant 0 : index
    %c0_1 = arith.constant 0 : index
    %3 = vector.load %arg7[%c0, %c0_1] : memref<16x128xf32, #tpu.memory_space<vmem>>, vector<16x128xf32>
    %c0_2 = arith.constant 0 : index
    %c0_3 = arith.constant 0 : index
    %4 = vector.load %arg3[%c0_2, %c0_3] : memref<16x128xf32, #tpu.memory_space<vmem>>, vector<16x128xf32>
    %c0_4 = arith.constant 0 : index
    %c0_5 = arith.constant 0 : index
    %5 = vector.load %arg4[%c0_4, %c0_5] : memref<128x128xf32, #tpu.memory_space<vmem>>, vector<128x128xf32>
    %cst = arith.constant dense<0.000000e+00> : vector<16x128xf32>
    %6 = tpu.matmul %4, %5, %cst {dimension_numbers = #tpu.dot_dimension_numbers<[1], [0], [0], [1], [0, 0, 1, 1], [], []>} : vector<16x128xf32>, vector<128x128xf32>, vector<16x128xf32> -> vector<16x128xf32>
    %7 = arith.addf %3, %6 : vector<16x128xf32>
    %c0_6 = arith.constant 0 : index
    %c0_7 = arith.constant 0 : index
    %8 = vector.load %arg7[%c0_6, %c0_7] : memref<16x128xf32, #tpu.memory_space<vmem>>, vector<16x128xf32>
    tpu.vector_store %arg7[%c0_6, %c0_7], %7 {strides = array<i32>} : memref<16x128xf32, #tpu.memory_space<vmem>>, vector<16x128xf32>,
    %c0_i32_8 = arith.constant 0 : i32
    %9 = arith.cmpi eq, %arg2, %c0_i32_8 : i32
    %10 = arith.extui %9 : i1 to i32
    %c0_i32_9 = arith.constant 0 : i32
    %11 = arith.cmpi ne, %10, %c0_i32_9 : i32
    scf.if %11 {
      %c0_10 = arith.constant 0 : index
      %c0_11 = arith.constant 0 : index
      %12 = vector.load %arg7[%c0_10, %c0_11] : memref<16x128xf32, #tpu.memory_space<vmem>>, vector<16x128xf32>
      %c0_12 = arith.constant 0 : index
      %c0_13 = arith.constant 0 : index
      %13 = vector.load %arg5[%c0_12, %c0_13] : memref<1x128xf32, #tpu.memory_space<vmem>>, vector<1x128xf32>
      %14 = vector.broadcast %13 : vector<1x128xf32> to vector<16x128xf32>
      %15 = arith.addf %12, %14 : vector<16x128xf32>
      %c0_14 = arith.constant 0 : index
      %c0_15 = arith.constant 0 : index
      %16 = vector.load %arg6[%c0_14, %c0_15] : memref<16x128xf32, #tpu.memory_space<vmem>>, vector<16x128xf32>
      tpu.vector_store %arg6[%c0_14, %c0_15], %15 {strides = array<i32>} : memref<16x128xf32, #tpu.memory_space<vmem>>, vector<16x128xf32>,
    } else {
    }
    return
  }
  func.func @transform_0(%arg0: i32, %arg1: i32, %arg2: i32) -> (i32, i32) {
    %c0_i32 = arith.constant 0 : i32
    return %arg0, %arg2 : i32, i32
  }
  func.func @transform_1(%arg0: i32, %arg1: i32, %arg2: i32) -> (i32, i32) {
    %c0_i32 = arith.constant 0 : i32
    return %arg2, %arg1 : i32, i32
  }
  func.func @transform_2(%arg0: i32, %arg1: i32, %arg2: i32) -> (i32, i32) {
    %c0_i32 = arith.constant 0 : i32
    %c0_i32_0 = arith.constant 0 : i32
    return %c0_i32, %arg1 : i32, i32
  }
  func.func @transform_3(%arg0: i32, %arg1: i32, %arg2: i32) -> (i32, i32) {
    %c0_i32 = arith.constant 0 : i32
    return %arg0, %arg1 : i32, i32
  }
}

</mosaic_0001>

<bundles_post_ra>
// kernel: squeeze.1
= control target key start
LH: loop header
LB: loop body
LE: loop exit
PB: predicated region body
PF: predicated region fallthrough
CT: control target
= control target key end

     0   :  { %vm3_vm0 = vcmask 261120   ;;  %s40_s0 = inlined_call_operand.vmem [shape: f32[14,32], index: 0, kind: input, shape index: {}]   ;;  %s41_s1 = inlined_call_operand.vmem [shape: f32[2,7,32], index: 1, kind: output, shape index: {}]  }
   0x1   :  { %v2_v0 = vld [vmem:[%s40_s0] sm:$0xff]   ;;  %v13_v1 = vld [vmem:[%s40_s0 + $0x8] sm:$0x3f]  }
   0x2   :  { %4 = vst.msk [vmem:[%s41_s1] sm:$0x7f] %vm3_vm0, %v2_v0   ;;  %12 = vst.msk [vmem:[%s41_s1 + $0x1] sm:$0x80] %vm3_vm0, %v2_v0  }
   0x3   :  { %14 = vst.msk [vmem:[%s41_s1 + $0x9] sm:$0x3f] %vm3_vm0, %v13_v1  }

// kernel: decoder_rnn_forward.4
= control target key start
LH: loop header
LB: loop body
LE: loop exit
PB: predicated region body
PF: predicated region fallthrough
CT: control target
= control target key end

     0   :  { %s330_s0 = inlined_call_operand.vmem [shape: s32[16], index: 0, kind: input, shape index: {}]   ;;  %s331_s1 = inlined_call_operand.vmem [shape: f32[128,1,32], index: 1, kind: input, shape index: {}]   ;;  %s332_s2 = inlined_call_operand.vmem [shape: f32[16,1,32], index: 2, kind: output, shape index: {}]  }
   0x1   :  { %s7_s11 = sshll.u32 %s330_s0, 4  ;;  %s8_s11 = int_to_ptr.vmem [resolvable:$true] %s7_s11 }
   0x2   :  { %s221_s12 = scalar_lea.vmem %s8_s11, 16  ;;  %p226_p1 = scmp.lt.s32.totalorder %s8_s11, %s8_s11 }
   0x3   :  { %p222_p0 = scmp.ne.s32.totalorder %s8_s11, %s221_s12  ;;  %p227_p2 = scmp.lt.s32.totalorder %s221_s12, %s221_s12 }
   0x5   :  { %p228_p3 = por %p227_p2, %p226_p1 }
   0x7   :  { %p229_p4 = pnand %p228_p3, %p222_p0 }
   0x9   :  { %232 = shalt.err (!%p229_p4)  }
   0xa   :  { %s243_s13 = smov [#allocation3]  }
   0xb   :  { %10 = dma.vmem_to_smem %s8_s11, 16, %s243_s13, [#allocation2] }
   0xc   :  { %237 = dma.done.wait [#allocation2], 16 }
   0xd   :  { %238 = vsyncadd [#allocation2], 4294967280 }
   0xe   :  { %12 = sfence }
   0xf   :  { %s262_s14 = smov 0  }
  0x10 LB: > { %s197_s0 = sadd.s32 4294967295, %s241_s14   ;;  %p200_p5 = scmp.ge.s32.totalorder %s241_s14, 1  ;;  %s241_s14 = sphi %s262_s14, %s18_s14  }
  0x11   : > { %p84_p6 = scmp.lt.s32.totalorder %s241_s14, 3 }
  0x13   : > { %p85_p7 = pnand %p200_p5, %p84_p6 }
  0x14   : > { %s270_s15 = sshll.u32 (!%p85_p7), %s197_s0, 3  ;;  %vm107_vm0 = vcmask (!%p85_p7), 253952  }
  0x15   : > { %88 = sbr.rel (%p85_p7) target bundleno = 41 (0x29), region = 24  ;;  %p99_p8 = scmp.lt.s32.totalorder (!%p85_p7), %s270_s15, 15 }
  0x16   : > { %s104_s16 = sld [smem:[#allocation3 + %s270_s15]] (!%p85_p7)  ;;  %s109_s17 = sadd.s32 (!%p85_p7), 1, %s270_s15 }
  0x17   : > { %s115_s18 = sadd.s32 (!%p85_p7), 2, %s270_s15  ;;  %s110_s20 = sld [smem:[#allocation3 + %s109_s17]] (!%p85_p7) }
  0x18   : > { %s116_s21 = sld [smem:[#allocation3 + %s115_s18]] (!%p85_p7)  ;;  %s121_s25 = sadd.s32 (!%p85_p7), 3, %s270_s15 }
  0x19   : > { %s122_s26 = sld [smem:[#allocation3 + %s121_s25]] (!%p85_p7)  ;;  %s127_s27 = sadd.s32 (!%p85_p7), 4, %s270_s15 }
  0x1a   : > { %s128_s3 = sld [smem:[#allocation3 + %s127_s27]] (!%p85_p7)  ;;  %s133_s4 = sadd.s32 (!%p85_p7), 5, %s270_s15 }
  0x1b   : > { %s139_s5 = sadd.s32 (!%p85_p7), 6, %s270_s15  ;;  %s134_s6 = sld [smem:[#allocation3 + %s133_s4]] (!%p85_p7) }
  0x1c   : > { %s100_s19 = scalar_select %p99_p8, %s270_s15, 15 }
  0x1d   : > { %s105_s30 = scalar_lea.vmem %s331_s1, %s104_s16  ;;  %s140_s7 = sld [smem:[#allocation3 + %s139_s5]] }
  0x1e   : > { %s280_s24 = scalar_lea.vmem %s332_s2, %s100_s19  ;;  %v106_v0 = vld [vmem:[%s105_s30] sm:$0x1]  ;;  %s111_s10 = scalar_lea.vmem %s331_s1, %s110_s20 }
  0x1f   : > { %108 = vst.msk [vmem:[%s280_s24] sm:$0x1] %vm107_vm0, %v106_v0  ;;  %s117_s13 = scalar_lea.vmem %s331_s1, %s116_s21  ;;  %v112_v1 = vld [vmem:[%s111_s10] sm:$0x1]  ;;  %s145_s0 = sadd.s32 7, %s270_s15 }
  0x20   : > { %v118_v2 = vld [vmem:[%s117_s13] sm:$0x1]  ;;  %203 = vst.msk [vmem:[%s280_s24 + $0x1] sm:$0x1] %vm107_vm0, %v112_v1  ;;  %s123_s18 = scalar_lea.vmem %s331_s1, %s122_s26  ;;  %s146_s19 = sld [smem:[#allocation3 + %s145_s0]] }
  0x21   : > { %204 = vst.msk [vmem:[%s280_s24 + $0x2] sm:$0x1] %vm107_vm0, %v118_v2  ;;  %v124_v3 = vld [vmem:[%s123_s18] sm:$0x1]  ;;  %s129_s21 = scalar_lea.vmem %s331_s1, %s128_s3  ;;  %s135_s25 = scalar_lea.vmem %s331_s1, %s134_s6 }
  0x22   : > { %205 = vst.msk [vmem:[%s280_s24 + $0x3] sm:$0x1] %vm107_vm0, %v124_v3  ;;  %v130_v4 = vld [vmem:[%s129_s21] sm:$0x1] }
  0x23   : > { %206 = vst.msk [vmem:[%s280_s24 + $0x4] sm:$0x1] %vm107_vm0, %v130_v4  ;;  %s141_s29 = scalar_lea.vmem %s331_s1, %s140_s7  ;;  %v136_v5 = vld [vmem:[%s135_s25] sm:$0x1] }
  0x24   : > { %v142_v6 = vld [vmem:[%s141_s29] sm:$0x1]  ;;  %207 = vst.msk [vmem:[%s280_s24 + $0x5] sm:$0x1] %vm107_vm0, %v136_v5 }
  0x25   : > { %208 = vst.msk [vmem:[%s280_s24 + $0x6] sm:$0x1] %vm107_vm0, %v142_v6 }
  0x26   : > { %s147_s3 = scalar_lea.vmem %s331_s1, %s146_s19 }
  0x27   : > { %v148_v7 = vld [vmem:[%s147_s3] sm:$0x1] }
  0x28   : > { %209 = vst.msk [vmem:[%s280_s24 + $0x7] sm:$0x1] %vm107_vm0, %v148_v7 }
  0x29 PF: > { %s18_s14 = sadd.s32 1, %s241_s14  }
  0x2a   : > { %p15_p9 = scmp.ge.s32.totalorder %s18_s14, 4  }
  0x2c   :  { %17 = sbr.rel (!%p15_p9) target bundleno = 16 (0x10), region = 66 }

// kernel: decoder_rnn_forward.7
= control target key start
LH: loop header
LB: loop body
LE: loop exit
PB: predicated region body
PF: predicated region fallthrough
CT: control target
= control target key end

     0   :  { %s357_s0 = inlined_call_operand.vmem [shape: f32[16,128], index: 0, kind: input, shape index: {}]   ;;  %s358_s1 = inlined_call_operand.vmem [shape: f32[128,128], index: 1, kind: input, shape index: {}]   ;;  %s359_s2 = inlined_call_operand.vmem [shape: f32[1,128], index: 2, kind: input, shape index: {}]   ;;  %s360_s3 = inlined_call_operand.hbm [shape: f32[16,128], index: 3, kind: output, shape index: {}]  }
   0x1   :  { %v25_v0 = vld [vmem:[%s358_s1] sm:$0xff]  ;;  %v26_v1 = vld [vmem:[%s358_s1 + $0x8] sm:$0xff]  ;;  %v27_v2 = vld [vmem:[%s358_s1 + $0x10] sm:$0xff] }
   0x2   :  { %v206_v3 = vpack.c.bf16 %v26_v1, %v25_v0  ;;  %v28_v4 = vld [vmem:[%s358_s1 + $0x18] sm:$0xff]  ;;  %v29_v6 = vld [vmem:[%s358_s1 + $0x20] sm:$0xff]  ;;  %v30_v7 = vld [vmem:[%s358_s1 + $0x28] sm:$0xff] }
   0x3   :  { %v210_v5 = vpack.c.bf16 %v28_v4, %v27_v2  ;;  %v214_v8 = vpack.c.bf16 %v30_v7, %v29_v6  ;;  %v23_v9 = vld [vmem:[%s357_s0] sm:$0xff]  ;;  %v31_v10 = vld [vmem:[%s358_s1 + $0x30] sm:$0xff]  ;;  %v32_v11 = vld [vmem:[%s358_s1 + $0x38] sm:$0xff] }
   0x4   :  { %207 = vmatprep.subr.bf16.mxu0 %v206_v3  ;;  %203 = vmatprep.mubr.f32.mxu0 %v23_v9 }
   0x5   :  { %209 = vmatpush3.bf16.msra.mxu0 %v206_v3 }
   0x6   :  { %211 = vmatprep.subr.bf16.mxu0 %v210_v5 }
   0x7   :  { %8 = vsyncpa [#allocation4], 0  ;;  %v218_v12 = vpack.c.bf16 %v32_v11, %v31_v10  ;;  %v33_v13 = vld [vmem:[%s358_s1 + $0x40] sm:$0xff]  ;;  %v34_v14 = vld [vmem:[%s358_s1 + $0x48] sm:$0xff]  ;;  %s265_s23 = smov [#allocation3]  }
   0x8   :  { %v222_v15 = vpack.c.bf16 %v34_v14, %v33_v13  ;;  %v35_v16 = vld [vmem:[%s358_s1 + $0x50] sm:$0xff]  ;;  %v36_v17 = vld [vmem:[%s358_s1 + $0x58] sm:$0xff]  ;;  %v37_v19 = vld [vmem:[%s358_s1 + $0x60] sm:$0xff]  ;;  %s141_s24 = sshll.u32 %s265_s23, 4  ;;  %s142_s24 = int_to_ptr.vmem [resolvable:$true] %s141_s24 }
   0x9   :  { %213 = vmatpush3.bf16.msra.mxu0 %v210_v5  ;;  %v226_v18 = vpack.c.bf16 %v36_v17, %v35_v16  ;;  %v38_v20 = vld [vmem:[%s358_s1 + $0x68] sm:$0xff]  ;;  %v39_v22 = vld [vmem:[%s358_s1 + $0x70] sm:$0xff]  ;;  %v40_v23 = vld [vmem:[%s358_s1 + $0x78] sm:$0xff]  ;;  %s241_s1 = scalar_lea.vmem %s142_s24, 256  ;;  %p246_p1 = scmp.lt.s32.totalorder %s142_s24, %s142_s24 }
   0xa   :  { %215 = vmatprep.subr.bf16.mxu0 %v214_v8  ;;  %v230_v21 = vpack.c.bf16 %v38_v20, %v37_v19  ;;  %v234_v24 = vpack.c.bf16 %v40_v23, %v39_v22  ;;  %v24_v25 = vld [vmem:[%s357_s0 + $0x8] sm:$0xff]  ;;  %v152_v26 = vld [vmem:[%s359_s2] ss:$0 sm:$0xff]  ;;  %p242_p0 = scmp.ne.s32.totalorder %s142_s24, %s241_s1  ;;  %p247_p2 = scmp.lt.s32.totalorder %s241_s1, %s241_s1 }
   0xc   :  { %p248_p3 = por %p247_p2, %p246_p1 }
   0xd   :  { %217 = vmatpush3.bf16.msra.mxu0 %v214_v8 }
   0xe   :  { %219 = vmatprep.subr.bf16.mxu0 %v218_v12  ;;  %p249_p4 = pnand %p248_p3, %p242_p0 }
  0x11   :  { %221 = vmatpush3.bf16.msra.mxu0 %v218_v12 }
  0x12   :  { %223 = vmatprep.subr.bf16.mxu0 %v222_v15 }
  0x15   :  { %225 = vmatpush3.bf16.msra.mxu0 %v222_v15 }
  0x16   :  { %227 = vmatprep.subr.bf16.mxu0 %v226_v18 }
  0x19   :  { %229 = vmatpush3.bf16.msra.mxu0 %v226_v18 }
  0x1a   :  { %231 = vmatprep.subr.bf16.mxu0 %v230_v21 }
  0x1d   :  { %233 = vmatpush3.bf16.msra.mxu0 %v230_v21 }
  0x1e   :  { %235 = vmatprep.subr.bf16.mxu0 %v234_v24 }
  0x21   :  { %237 = vmatpush3.bf16.msra.mxu0 %v234_v24 }
  0x24   :  { %204 = vmatmul.mubr.f32.vlgmr.msra.gmra.mrb[0].mxu0 %v24_v25 }
  0xf7   :  { %v205_v27 = vpop.f32.mrb[0].mxu0 }
  0xf8   :  { %v133_v28 = vadd.f32 %v205_v27, %v152_v26  ;;  %v107_v29 = vpop.f32.mrb[1].mxu0 }
  0xf9   :  { %v132_v30 = vadd.f32 %v152_v26, %v107_v29 }
  0xfa   :  { %135 = vst [vmem:[#allocation3 + $0x8] sm:$0xff] %v133_v28 }
  0xfb   :  { %134 = vst [vmem:[#allocation3] sm:$0xff] %v132_v30 }
  0xfc   :  { %252 = shalt.err (!%p249_p4)
}
  0xfd   :  { %s253_s2 = scalar_lea.hbm %s360_s3, 256 }
  0xfe   :  { %p254_p5 = scmp.ne.s32.totalorder %s360_s3, %s253_s2  ;;  %p257_p6 = scmp.lt.u32.totalorder %s253_s2, %s360_s3 }
 0x100   :  { %p259_p7 = pnand %p257_p6, %p254_p5 }
 0x102   :  { %262 = shalt.err (!%p259_p7)
}
 0x103   :  { %s266_s30 = smov 128   ;;  %s267_s4 = smov 8  }
 0x104   :  { %147 = dma.vmem_to_hbm [thread:$0]  %s142_s24, 256, %s360_s3, [#allocation4], %s266_s30, %s266_s30, %s267_s4  }
 0x105   :  { %263 = dma.done.wait [#allocation4], 256  }
 0x106   :  { %264 = vsyncadd [#allocation4], 4294967040 }
 0x107   :  { %151 = vsyncpa [#allocation4], 1 }

// kernel: decoder_rnn_forward.5
= control target key start
LH: loop header
LB: loop body
LE: loop exit
PB: predicated region body
PF: predicated region fallthrough
CT: control target
= control target key end

     0   :  { %s943_s12 = smov 0   ;;  %s945_s13 = smov 0   ;;  %s1191_s0 = inlined_call_operand.vmem [shape: f32[64,128], index: 0, kind: input, shape index: {}]   ;;  %s1192_s1 = inlined_call_operand.vmem [shape: f32[128,512], index: 1, kind: input, shape index: {}]   ;;  %s1193_s2 = inlined_call_operand.vmem [shape: f32[1,512], index: 2, kind: input, shape index: {}]   ;;  %s1194_s3 = inlined_call_operand.vmem [shape: f32[64,512], index: 3, kind: output, shape index: {}]  }
   0x1   :  { %s947_s14 = smov 0   ;;  %s949_s15 = smov 0  }
   0x2   :  { %s951_s16 = smov 0  }
   0x3 LB: > { %s28_s17 = sadd.s32 1, %s916_s15  ;;  %s774_s18 = sadd.s32 4294967295, %s920_s16   ;;  %s920_s16 = sphi %s951_s16, %s13_s16   ;;  %s916_s15 = sphi %s949_s15, %s1199_s15   ;;  %s912_s14 = sphi %s947_s14, %s1198_s14   ;;  %s908_s13 = sphi %s945_s13, %s1197_s13   ;;  %s904_s12 = sphi %s943_s12, %s1196_s12  }
   0x4   : > { %p30_p0 = scmp.ge.s32.totalorder %s28_s17, 2  ;;  %p76_p1 = scmp.ne.s32.totalorder %s908_s13, %s904_s12 }
   0x5   : > { %p77_p2 = scmp.eq.s32.totalorder %s920_s16, 0  ;;  %p134_p4 = scmp.eq.s32.totalorder %s774_s18, 1 }
   0x6   : > { %s1201_s17 = smov (%p30_p0, %s28_s17), 0  ;;  %s69_s20 = sadd.s32 1, %s908_s13 }
   0x7   : > { %p78_p3 = por %p77_p2, %p76_p1  ;;  %s65_s19 = ssub.s32 %s916_s15, %s1201_s17 }
   0x8   : > { %p67_p5 = scmp.eq.s32.totalorder %s65_s19, 0  ;;  %p978_p6 = por %p134_p4, %p76_p1 }
   0x9   : > { %p778_p7 = scmp.ge.s32.totalorder %s920_s16, 2 }
   0xa   : > { %s983_s22 = scalar_select %p67_p5, %s908_s13, %s69_s20  }
   0xb   : > { %168 = sbr.rel (%p778_p7) target bundleno = 38 (0x26), region = 20 }
  0x12   : > { %171 = sbr.rel (!%p78_p3) target bundleno = 38 (0x26), region = 24  ;;  %s173_s23 = sand.u32 (%p78_p3), 1, %s908_s13  }
  0x13   : > { %s791_s24 = sshll.u32 (%p78_p3), %s916_s15, 4  ;;  %s779_s25 = sshll.u32 (%p78_p3), %s173_s23, 8 }
  0x14   : > { %s991_s28 = scalar_lea.vmem (%p78_p3), %s1192_s1, %s791_s24  ;;  %s996_s29 = scalar_lea.vmem (%p78_p3), [#allocation3], %s779_s25 }
  0x15   : > { %v194_v0 = vld [vmem:[%s991_s28] sm:$0xff] (%p78_p3)  ;;  %v196_v1 = vld [vmem:[%s991_s28 + $0x8] sm:$0xff] (%p78_p3) }
  0x16   : > { %v198_v2 = vld [vmem:[%s991_s28 + $0x20] sm:$0xff] (%p78_p3)  ;;  %195 = vst [vmem:[%s996_s29] sm:$0xff] (%p78_p3), %v194_v0  ;;  %197 = vst [vmem:[%s996_s29 + $0x8] sm:$0xff] (%p78_p3), %v196_v1  ;;  %v200_v3 = vld [vmem:[%s991_s28 + $0x28] sm:$0xff] (%p78_p3) }
  0x17   : > { %199 = vst [vmem:[%s996_s29 + $0x10] sm:$0xff] (%p78_p3), %v198_v2  ;;  %v202_v4 = vld [vmem:[%s991_s28 + $0x40] sm:$0xff] (%p78_p3)  ;;  %v204_v5 = vld [vmem:[%s991_s28 + $0x48] sm:$0xff] (%p78_p3)  ;;  %201 = vst [vmem:[%s996_s29 + $0x18] sm:$0xff] (%p78_p3), %v200_v3 }
  0x18   : > { %203 = vst [vmem:[%s996_s29 + $0x20] sm:$0xff] (%p78_p3), %v202_v4  ;;  %205 = vst [vmem:[%s996_s29 + $0x28] sm:$0xff] (%p78_p3), %v204_v5  ;;  %v206_v6 = vld [vmem:[%s991_s28 + $0x60] sm:$0xff] (%p78_p3)  ;;  %v208_v7 = vld [vmem:[%s991_s28 + $0x68] sm:$0xff] (%p78_p3) }
  0x19   : > { %v210_v8 = vld [vmem:[%s991_s28 + $0x80] sm:$0xff]  ;;  %207 = vst [vmem:[%s996_s29 + $0x30] sm:$0xff] %v206_v6  ;;  %209 = vst [vmem:[%s996_s29 + $0x38] sm:$0xff] %v208_v7  ;;  %v212_v9 = vld [vmem:[%s991_s28 + $0x88] sm:$0xff] }
  0x1a   : > { %211 = vst [vmem:[%s996_s29 + $0x40] sm:$0xff] %v210_v8  ;;  %v214_v10 = vld [vmem:[%s991_s28 + $0xa0] sm:$0xff]  ;;  %v216_v11 = vld [vmem:[%s991_s28 + $0xa8] sm:$0xff]  ;;  %213 = vst [vmem:[%s996_s29 + $0x48] sm:$0xff] %v212_v9 }
  0x1b   : > { %215 = vst [vmem:[%s996_s29 + $0x50] sm:$0xff] %v214_v10  ;;  %217 = vst [vmem:[%s996_s29 + $0x58] sm:$0xff] %v216_v11  ;;  %v218_v12 = vld [vmem:[%s991_s28 + $0xc0] sm:$0xff]  ;;  %v220_v13 = vld [vmem:[%s991_s28 + $0xc8] sm:$0xff] }
  0x1c   : > { %v222_v14 = vld [vmem:[%s991_s28 + $0xe0] sm:$0xff]  ;;  %219 = vst [vmem:[%s996_s29 + $0x60] sm:$0xff] %v218_v12  ;;  %221 = vst [vmem:[%s996_s29 + $0x68] sm:$0xff] %v220_v13  ;;  %v224_v15 = vld [vmem:[%s991_s28 + $0xe8] sm:$0xff] }
  0x1d   : > { %223 = vst [vmem:[%s996_s29 + $0x70] sm:$0xff] %v222_v14  ;;  %v226_v16 = vld [vmem:[%s991_s28 + $0x100] sm:$0xff]  ;;  %v228_v17 = vld [vmem:[%s991_s28 + $0x108] sm:$0xff]  ;;  %225 = vst [vmem:[%s996_s29 + $0x78] sm:$0xff] %v224_v15 }
  0x1e   : > { %227 = vst [vmem:[%s996_s29 + $0x80] sm:$0xff] %v226_v16  ;;  %229 = vst [vmem:[%s996_s29 + $0x88] sm:$0xff] %v228_v17  ;;  %v230_v18 = vld [vmem:[%s991_s28 + $0x120] sm:$0xff]  ;;  %v232_v19 = vld [vmem:[%s991_s28 + $0x128] sm:$0xff] }
  0x1f   : > { %v234_v20 = vld [vmem:[%s991_s28 + $0x140] sm:$0xff]  ;;  %231 = vst [vmem:[%s996_s29 + $0x90] sm:$0xff] %v230_v18  ;;  %233 = vst [vmem:[%s996_s29 + $0x98] sm:$0xff] %v232_v19  ;;  %v236_v21 = vld [vmem:[%s991_s28 + $0x148] sm:$0xff] }
  0x20   : > { %235 = vst [vmem:[%s996_s29 + $0xa0] sm:$0xff] %v234_v20  ;;  %v238_v22 = vld [vmem:[%s991_s28 + $0x160] sm:$0xff]  ;;  %v240_v23 = vld [vmem:[%s991_s28 + $0x168] sm:$0xff]  ;;  %237 = vst [vmem:[%s996_s29 + $0xa8] sm:$0xff] %v236_v21 }
  0x21   : > { %239 = vst [vmem:[%s996_s29 + $0xb0] sm:$0xff] %v238_v22  ;;  %241 = vst [vmem:[%s996_s29 + $0xb8] sm:$0xff] %v240_v23  ;;  %v242_v24 = vld [vmem:[%s991_s28 + $0x180] sm:$0xff]  ;;  %v244_v25 = vld [vmem:[%s991_s28 + $0x188] sm:$0xff] }
  0x22   : > { %v246_v26 = vld [vmem:[%s991_s28 + $0x1a0] sm:$0xff]  ;;  %243 = vst [vmem:[%s996_s29 + $0xc0] sm:$0xff] %v242_v24  ;;  %245 = vst [vmem:[%s996_s29 + $0xc8] sm:$0xff] %v244_v25  ;;  %v248_v27 = vld [vmem:[%s991_s28 + $0x1a8] sm:$0xff] }
  0x23   : > { %247 = vst [vmem:[%s996_s29 + $0xd0] sm:$0xff] %v246_v26  ;;  %v250_v28 = vld [vmem:[%s991_s28 + $0x1c0] sm:$0xff]  ;;  %v252_v29 = vld [vmem:[%s991_s28 + $0x1c8] sm:$0xff]  ;;  %249 = vst [vmem:[%s996_s29 + $0xd8] sm:$0xff] %v248_v27 }
  0x24   : > { %251 = vst [vmem:[%s996_s29 + $0xe0] sm:$0xff] %v250_v28  ;;  %253 = vst [vmem:[%s996_s29 + $0xe8] sm:$0xff] %v252_v29  ;;  %v254_v30 = vld [vmem:[%s991_s28 + $0x1e0] sm:$0xff]  ;;  %v256_v31 = vld [vmem:[%s991_s28 + $0x1e8] sm:$0xff] }
  0x25   : > { %255 = vst [vmem:[%s996_s29 + $0xf0] sm:$0xff] %v254_v30  ;;  %257 = vst [vmem:[%s996_s29 + $0xf8] sm:$0xff] %v256_v31 }
  0x26 PF: > { %p782_p8 = scmp.ge.s32.totalorder %s920_s16, 1  ;;  %p270_p9 = scmp.lt.s32.totalorder %s920_s16, 3 }
  0x28   : > { %p271_p10 = pnand %p782_p8, %p270_p9 }
  0x29   : > { %s277_s30 = sand.u32 (!%p271_p10), 1, %s904_s12   ;;  %v922_v32 = vmov (!%p271_p10), 0.0   ;;  %v365_v17 = vld [vmem:[%s1191_s0] sm:$0xff] (!%p271_p10)  ;;  %v366_v19 = vld [vmem:[%s1191_s0 + $0x8] sm:$0xff] (!%p271_p10)  ;;  %v367_v21 = vld [vmem:[%s1191_s0 + $0x10] sm:$0xff] (!%p271_p10)  ;;  %v571_v25 = vlaneseq (!%p271_p10) }
  0x2a   : > { %274 = sbr.rel (%p271_p10) target bundleno = 316 (0x13c), region = 51  ;;  %s783_s4 = sshll.u32 (!%p271_p10), %s277_s30, 8  ;;  %469 = vmatprep.mubr.f32.mxu0 (!%p271_p10), %v922_v32  ;;  %493 = vmatprep.mubr.f32.mxu1 (!%p271_p10), %v922_v32  ;;  %v369_v18 = vld [vmem:[%s1191_s0 + $0x20] sm:$0xff] (!%p271_p10)  ;;  %v370_v20 = vld [vmem:[%s1191_s0 + $0x28] sm:$0xff] (!%p271_p10)  ;;  %v371_v22 = vld [vmem:[%s1191_s0 + $0x30] sm:$0xff] (!%p271_p10) }
  0x2b   : > { %s1066_s5 = scalar_lea.vmem (!%p271_p10), [#allocation3], %s783_s4  ;;  %v368_v23 = vld [vmem:[%s1191_s0 + $0x18] sm:$0xff] (!%p271_p10)  ;;  %s785_s4 = sshll.u32 (!%p271_p10), %s912_s14, 1  ;;  %v572_v26 = vshrl.u32 (!%p271_p10), %v571_v25, 7 }
  0x2c   : > { %v374_v33 = vld [vmem:[%s1066_s5 + $0x8] sm:$0xff] (!%p271_p10)  ;;  %v376_v34 = vld [vmem:[%s1066_s5 + $0x18] sm:$0xff] (!%p271_p10)  ;;  %v373_v35 = vld [vmem:[%s1066_s5] sm:$0xff] (!%p271_p10)  ;;  %p323_p11 = scmp.lt.s32.totalorder (!%p271_p10), %s785_s4, 3  ;;  %s784_s8 = sshll.u32 (!%p271_p10), %s277_s30, 7 }
  0x2d   : > { %v793_v36 = vpack.c.bf16 (!%p271_p10), %v376_v34, %v374_v33  ;;  %v375_v37 = vld [vmem:[%s1066_s5 + $0x10] sm:$0xff] (!%p271_p10)  ;;  %v378_v38 = vld [vmem:[%s1066_s5 + $0x28] sm:$0xff] (!%p271_p10)  ;;  %v380_v39 = vld [vmem:[%s1066_s5 + $0x38] sm:$0xff] (!%p271_p10)  ;;  %v573_v27 = vsub.s32 (!%p271_p10), 0, %v572_v26  ;;  %v577_v29 = vsub.s32 (!%p271_p10), 1, %v572_v26  ;;  %s1136_s9 = scalar_lea.vmem (!%p271_p10), [#allocation4], %s784_s8 }
  0x2e   : > { %v795_v40 = vpack.c.bf16 (!%p271_p10), %v375_v37, %v373_v35  ;;  %v797_v41 = vpack.c.bf16 (!%p271_p10), %v380_v39, %v378_v38  ;;  %v377_v42 = vld [vmem:[%s1066_s5 + $0x20] sm:$0xff] (!%p271_p10)  ;;  %v379_v43 = vld [vmem:[%s1066_s5 + $0x30] sm:$0xff] (!%p271_p10)  ;;  %v382_v44 = vld [vmem:[%s1066_s5 + $0x48] sm:$0xff] (!%p271_p10) }
  0x2f   : > { %794 = vmatprep.subr.bf16.mxu0 (!%p271_p10), %v793_v36  ;;  %825 = vmatprep.subr.bf16.mxu1 (!%p271_p10), %v793_v36  ;;  %v384_v45 = vld [vmem:[%s1066_s5 + $0x58] sm:$0xff] (!%p271_p10)  ;;  %v799_v46 = vpack.c.bf16 (!%p271_p10), %v379_v43, %v377_v42  ;;  %v381_v48 = vld [vmem:[%s1066_s5 + $0x40] sm:$0xff] (!%p271_p10)  ;;  %v383_v49 = vld [vmem:[%s1066_s5 + $0x50] sm:$0xff] (!%p271_p10) }
  0x30   : > { %796 = vmatpush1.bf16.msra.mxu0 (!%p271_p10), %v795_v40  ;;  %833 = vmatpush1.bf16.msra.mxu1 (!%p271_p10), %v795_v40  ;;  %v801_v47 = vpack.c.bf16 (!%p271_p10), %v384_v45, %v382_v44  ;;  %v386_v50 = vld [vmem:[%s1066_s5 + $0x68] sm:$0xff] (!%p271_p10)  ;;  %v388_v51 = vld [vmem:[%s1066_s5 + $0x78] sm:$0xff] (!%p271_p10)  ;;  %v803_v52 = vpack.c.bf16 (!%p271_p10), %v383_v49, %v381_v48  ;;  %v385_v54 = vld [vmem:[%s1066_s5 + $0x60] sm:$0xff] (!%p271_p10) }
  0x31   : > { %798 = vmatprep.subr.bf16.mxu0 %v797_v41  ;;  %826 = vmatprep.subr.bf16.mxu1 %v797_v41  ;;  %v805_v53 = vpack.c.bf16 %v388_v51, %v386_v50  ;;  %v387_v55 = vld [vmem:[%s1066_s5 + $0x70] sm:$0xff]  ;;  %v390_v56 = vld [vmem:[%s1066_s5 + $0x88] sm:$0xff]  ;;  %v392_v57 = vld [vmem:[%s1066_s5 + $0x98] sm:$0xff]  ;;  %s1203_s4 = smov (!%p323_p11, %s785_s4), 3  ;;  %s792_s12 = sshll.u32 (%p978_p6), %s912_s14, 4 }
  0x32   : > { %v807_v58 = vpack.c.bf16 %v387_v55, %v385_v54  ;;  %v809_v59 = vpack.c.bf16 %v392_v57, %v390_v56  ;;  %v389_v60 = vld [vmem:[%s1066_s5 + $0x80] sm:$0xff]  ;;  %v391_v61 = vld [vmem:[%s1066_s5 + $0x90] sm:$0xff]  ;;  %v394_v62 = vld [vmem:[%s1066_s5 + $0xa8] sm:$0xff]  ;;  %s325_s7 = scalar_lea.vmem %s1193_s2, %s1203_s4  ;;  %s625_s11 = scalar_lea.vmem (%p978_p6), %s1194_s3, %s792_s12 }
  0x33   : > { %v396_v63 = vld [vmem:[%s1066_s5 + $0xb8] sm:$0xff]  ;;  %v811_v0 = vpack.c.bf16 %v391_v61, %v389_v60  ;;  %v393_v2 = vld [vmem:[%s1066_s5 + $0xa0] sm:$0xff]  ;;  %v395_v3 = vld [vmem:[%s1066_s5 + $0xb0] sm:$0xff] }
  0x34   : > { %800 = vmatpush1.bf16.msra.mxu0 %v799_v46  ;;  %834 = vmatpush1.bf16.msra.mxu1 %v799_v46  ;;  %v813_v1 = vpack.c.bf16 %v396_v63, %v394_v62  ;;  %v398_v4 = vld [vmem:[%s1066_s5 + $0xc8] sm:$0xff]  ;;  %v400_v5 = vld [vmem:[%s1066_s5 + $0xd8] sm:$0xff]  ;;  %v815_v6 = vpack.c.bf16 %v395_v3, %v393_v2  ;;  %v397_v8 = vld [vmem:[%s1066_s5 + $0xc0] sm:$0xff] }
  0x35   : > { %802 = vmatprep.subr.bf16.mxu0 %v801_v47  ;;  %827 = vmatprep.subr.bf16.mxu1 %v801_v47  ;;  %v817_v7 = vpack.c.bf16 %v400_v5, %v398_v4  ;;  %v399_v9 = vld [vmem:[%s1066_s5 + $0xd0] sm:$0xff]  ;;  %v402_v10 = vld [vmem:[%s1066_s5 + $0xe8] sm:$0xff]  ;;  %v404_v11 = vld [vmem:[%s1066_s5 + $0xf8] sm:$0xff] }
  0x36   : > { %v819_v12 = vpack.c.bf16 %v399_v9, %v397_v8  ;;  %v821_v13 = vpack.c.bf16 %v404_v11, %v402_v10  ;;  %v401_v14 = vld [vmem:[%s1066_s5 + $0xe0] sm:$0xff]  ;;  %v403_v15 = vld [vmem:[%s1066_s5 + $0xf0] sm:$0xff]  ;;  %v372_v24 = vld [vmem:[%s1191_s0 + $0x38] sm:$0xff] }
  0x37   : > { %v823_v16 = vpack.c.bf16 %v403_v15, %v401_v14  ;;  %v569_v28 = vld [vmem:[%s325_s7] sm:$0x3] }
  0x38   : > { %804 = vmatpush1.bf16.msra.mxu0 %v803_v52  ;;  %835 = vmatpush1.bf16.msra.mxu1 %v803_v52  ;;  %v574_v30 = vrot.slane %v569_v28, %v573_v27  ;;  %v578_v31 = vrot.slane %v569_v28, %v577_v29 }
  0x39   : > { %806 = vmatprep.subr.bf16.mxu0 %v805_v53  ;;  %828 = vmatprep.subr.bf16.mxu1 %v805_v53 }
  0x3c   : > { %808 = vmatpush1.bf16.msra.mxu0 %v807_v58  ;;  %836 = vmatpush1.bf16.msra.mxu1 %v807_v58 }
  0x3d   : > { %810 = vmatprep.subr.bf16.mxu0 %v809_v59  ;;  %829 = vmatprep.subr.bf16.mxu1 %v809_v59 }
  0x40   : > { %812 = vmatpush1.bf16.msra.mxu0 %v811_v0  ;;  %837 = vmatpush1.bf16.msra.mxu1 %v811_v0 }
  0x41   : > { %814 = vmatprep.subr.bf16.mxu0 %v813_v1  ;;  %830 = vmatprep.subr.bf16.mxu1 %v813_v1 }
  0x44   : > { %816 = vmatpush1.bf16.msra.mxu0 %v815_v6  ;;  %838 = vmatpush1.bf16.msra.mxu1 %v815_v6 }
  0x45   : > { %818 = vmatprep.subr.bf16.mxu0 %v817_v7  ;;  %831 = vmatprep.subr.bf16.mxu1 %v817_v7 }
  0x48   : > { %820 = vmatpush1.bf16.msra.mxu0 %v819_v12  ;;  %839 = vmatpush1.bf16.msra.mxu1 %v819_v12 }
  0x49   : > { %822 = vmatprep.subr.bf16.mxu0 %v821_v13  ;;  %832 = vmatprep.subr.bf16.mxu1 %v821_v13 }
  0x4c   : > { %824 = vmatpush1.bf16.msra.mxu0 %v823_v16  ;;  %840 = vmatpush1.bf16.msra.mxu1 %v823_v16 }
  0x4f   : > { %470 = vmatmul.mubr.f32.vlgmr.msra.gmra.mrb[0].mxu0 %v365_v17  ;;  %494 = vmatmul.mubr.f32.vlgmr.msra.gmra.mrb[0].mxu1 %v369_v18 }
  0x50   : > { %475 = vmatprep.mubr.f32.mxu0 %v922_v32  ;;  %499 = vmatprep.mubr.f32.mxu1 %v922_v32 }
  0x53   : > { %476 = vmatmul.mubr.f32.gmra.mrb[2].mxu0 %v366_v19  ;;  %500 = vmatmul.mubr.f32.gmra.mrb[2].mxu1 %v370_v20 }
  0x54   : > { %481 = vmatprep.mubr.f32.mxu0 %v922_v32  ;;  %505 = vmatprep.mubr.f32.mxu1 %v922_v32 }
  0x57   : > { %482 = vmatmul.mubr.f32.gmra.mrb[4].mxu0 %v367_v21  ;;  %506 = vmatmul.mubr.f32.gmra.mrb[4].mxu1 %v371_v22 }
  0x58   : > { %487 = vmatprep.mubr.f32.mxu0 %v922_v32  ;;  %511 = vmatprep.mubr.f32.mxu1 %v922_v32 }
  0x5b   : > { %488 = vmatmul.mubr.f32.gmra.mrb[6].mxu0 %v368_v23  ;;  %512 = vmatmul.mubr.f32.gmra.mrb[6].mxu1 %v372_v24 }
 0x122   : > { %v471_v32 = vpop.f32.mrb[0].mxu0  ;;  %v495_v33 = vpop.f32.mrb[0].mxu1 }
 0x123   : > { %v581_v34 = vadd.f32 %v574_v30, %v471_v32  ;;  %v589_v35 = vadd.f32 %v574_v30, %v495_v33  ;;  %v473_v36 = vpop.f32.mrb[1].mxu0  ;;  %v497_v37 = vpop.f32.mrb[1].mxu1 }
 0x124   : > { %v582_v38 = vadd.f32 %v578_v31, %v473_v36  ;;  %v590_v39 = vadd.f32 %v578_v31, %v497_v37 }
 0x125   : > { %597 = vst [vmem:[%s1136_s9] sm:$0xff] %v581_v34  ;;  %605 = vst [vmem:[%s1136_s9 + $0x40] sm:$0xff] %v589_v35 }
 0x126   : > { %598 = vst [vmem:[%s1136_s9 + $0x8] sm:$0xff] %v582_v38  ;;  %606 = vst [vmem:[%s1136_s9 + $0x48] sm:$0xff] %v590_v39  ;;  %v477_v40 = vpop.f32.mrb[2].mxu0  ;;  %v501_v41 = vpop.f32.mrb[2].mxu1 }
 0x127   : > { %v583_v42 = vadd.f32 %v574_v30, %v477_v40  ;;  %v591_v43 = vadd.f32 %v574_v30, %v501_v41  ;;  %v479_v44 = vpop.f32.mrb[3].mxu0  ;;  %v503_v45 = vpop.f32.mrb[3].mxu1 }
 0x128   : > { %v584_v46 = vadd.f32 %v578_v31, %v479_v44  ;;  %v592_v47 = vadd.f32 %v578_v31, %v503_v45 }
 0x129   : > { %599 = vst [vmem:[%s1136_s9 + $0x10] sm:$0xff] %v583_v42  ;;  %607 = vst [vmem:[%s1136_s9 + $0x50] sm:$0xff] %v591_v43 }
 0x12a   : > { %600 = vst [vmem:[%s1136_s9 + $0x18] sm:$0xff] %v584_v46  ;;  %608 = vst [vmem:[%s1136_s9 + $0x58] sm:$0xff] %v592_v47  ;;  %v483_v48 = vpop.f32.mrb[4].mxu0  ;;  %v507_v49 = vpop.f32.mrb[4].mxu1 }
 0x12b   : > { %v585_v50 = vadd.f32 %v574_v30, %v483_v48  ;;  %v593_v51 = vadd.f32 %v574_v30, %v507_v49  ;;  %v485_v52 = vpop.f32.mrb[5].mxu0  ;;  %v509_v53 = vpop.f32.mrb[5].mxu1 }
 0x12c   : > { %v586_v54 = vadd.f32 %v578_v31, %v485_v52  ;;  %v594_v55 = vadd.f32 %v578_v31, %v509_v53  ;;  %619 = sbr.rel (!%p978_p6) target bundleno = 316 (0x13c), region = 67  ;;  %v638_v0 = vld [vmem:[%s1136_s9] sm:$0xff] (%p978_p6) }
 0x12d   : > { %601 = vst [vmem:[%s1136_s9 + $0x20] sm:$0xff] %v585_v50  ;;  %609 = vst [vmem:[%s1136_s9 + $0x60] sm:$0xff] %v593_v51  ;;  %v640_v1 = vld [vmem:[%s1136_s9 + $0x8] sm:$0xff] (%p978_p6)  ;;  %v654_v8 = vld [vmem:[%s1136_s9 + $0x40] sm:$0xff] (%p978_p6) }
 0x12e   : > { %602 = vst [vmem:[%s1136_s9 + $0x28] sm:$0xff] %v586_v54  ;;  %610 = vst [vmem:[%s1136_s9 + $0x68] sm:$0xff] %v594_v55  ;;  %v489_v56 = vpop.f32.mrb[6].mxu0  ;;  %v513_v57 = vpop.f32.mrb[6].mxu1  ;;  %v656_v9 = vld [vmem:[%s1136_s9 + $0x48] sm:$0xff] (%p978_p6) }
 0x12f   : > { %v587_v58 = vadd.f32 %v574_v30, %v489_v56  ;;  %v595_v59 = vadd.f32 %v574_v30, %v513_v57  ;;  %v491_v60 = vpop.f32.mrb[7].mxu0  ;;  %v515_v61 = vpop.f32.mrb[7].mxu1  ;;  %639 = vst [vmem:[%s625_s11] sm:$0xff] (%p978_p6), %v638_v0  ;;  %641 = vst [vmem:[%s625_s11 + $0x8] sm:$0xff] (%p978_p6), %v640_v1 }
 0x130   : > { %v588_v62 = vadd.f32 %v578_v31, %v491_v60  ;;  %v596_v63 = vadd.f32 %v578_v31, %v515_v61  ;;  %v642_v2 = vld [vmem:[%s1136_s9 + $0x10] sm:$0xff] (%p978_p6)  ;;  %655 = vst [vmem:[%s625_s11 + $0x80] sm:$0xff] (%p978_p6), %v654_v8  ;;  %657 = vst [vmem:[%s625_s11 + $0x88] sm:$0xff] (%p978_p6), %v656_v9 }
 0x131   : > { %603 = vst [vmem:[%s1136_s9 + $0x30] sm:$0xff] %v587_v58  ;;  %611 = vst [vmem:[%s1136_s9 + $0x70] sm:$0xff] %v595_v59  ;;  %v644_v3 = vld [vmem:[%s1136_s9 + $0x18] sm:$0xff] (%p978_p6)  ;;  %v658_v10 = vld [vmem:[%s1136_s9 + $0x50] sm:$0xff] (%p978_p6) }
 0x132   : > { %604 = vst [vmem:[%s1136_s9 + $0x38] sm:$0xff] %v588_v62  ;;  %612 = vst [vmem:[%s1136_s9 + $0x78] sm:$0xff] %v596_v63  ;;  %v660_v11 = vld [vmem:[%s1136_s9 + $0x58] sm:$0xff] (%p978_p6) }
 0x133   : > { %643 = vst [vmem:[%s625_s11 + $0x20] sm:$0xff] %v642_v2  ;;  %645 = vst [vmem:[%s625_s11 + $0x28] sm:$0xff] %v644_v3 }
 0x134   : > { %v646_v4 = vld [vmem:[%s1136_s9 + $0x20] sm:$0xff]  ;;  %659 = vst [vmem:[%s625_s11 + $0xa0] sm:$0xff] %v658_v10  ;;  %661 = vst [vmem:[%s625_s11 + $0xa8] sm:$0xff] %v660_v11 }
 0x135   : > { %v648_v5 = vld [vmem:[%s1136_s9 + $0x28] sm:$0xff]  ;;  %647 = vst [vmem:[%s625_s11 + $0x40] sm:$0xff] %v646_v4  ;;  %v662_v12 = vld [vmem:[%s1136_s9 + $0x60] sm:$0xff] }
 0x136   : > { %649 = vst [vmem:[%s625_s11 + $0x48] sm:$0xff] %v648_v5  ;;  %v664_v13 = vld [vmem:[%s1136_s9 + $0x68] sm:$0xff]  ;;  %663 = vst [vmem:[%s625_s11 + $0xc0] sm:$0xff] %v662_v12 }
 0x137   : > { %665 = vst [vmem:[%s625_s11 + $0xc8] sm:$0xff] %v664_v13 }
 0x138   : > { %v650_v6 = vld [vmem:[%s1136_s9 + $0x30] sm:$0xff] }
 0x139   : > { %v652_v7 = vld [vmem:[%s1136_s9 + $0x38] sm:$0xff]  ;;  %651 = vst [vmem:[%s625_s11 + $0x60] sm:$0xff] %v650_v6  ;;  %v666_v14 = vld [vmem:[%s1136_s9 + $0x70] sm:$0xff] }
 0x13a   : > { %653 = vst [vmem:[%s625_s11 + $0x68] sm:$0xff] %v652_v7  ;;  %667 = vst [vmem:[%s625_s11 + $0xe0] sm:$0xff] %v666_v14  ;;  %v668_v15 = vld [vmem:[%s1136_s9 + $0x78] sm:$0xff] }
 0x13b   : > { %669 = vst [vmem:[%s625_s11 + $0xe8] sm:$0xff] %v668_v15 }
 0x13c PF: > { %s13_s16 = sadd.s32 1, %s920_s16   ;;  %s1196_s12 = smov %s908_s13 }
 0x13d   : > { %p10_p12 = scmp.ge.s32.totalorder %s13_s16, 4   ;;  %s1197_s13 = smov %s983_s22 }
 0x13e   : > { %s1198_s14 = smov %s916_s15  ;;  %s1199_s15 = smov %s1201_s17 }
 0x13f   :  { %12 = sbr.rel (!%p10_p12) target bundleno = 3 (0x3), region = 127 }

// kernel: decoder_rnn_forward.6
= control target key start
LH: loop header
LB: loop body
LE: loop exit
PB: predicated region body
PF: predicated region fallthrough
CT: control target
= control target key end

     0   :  { %s571_s9 = smov 0   ;;  %s789_s0 = inlined_call_operand.vmem [shape: f32[8,8,512], index: 0, kind: input, shape index: {}]   ;;  %s790_s1 = inlined_call_operand.vmem [shape: f32[128,512], index: 1, kind: input, shape index: {}]   ;;  %s791_s2 = inlined_call_operand.vmem [shape: f32[8,8,128], index: 2, kind: output, shape index: {}]  }
   0x1 LB: > { %s444_s10 = sadd.s32 4294967295, %s552_s9   ;;  %p448_p0 = scmp.ge.s32.totalorder %s552_s9, 1  ;;  %s552_s9 = sphi %s571_s9, %s12_s9  }
   0x2   : > { %p112_p1 = scmp.lt.s32.totalorder %s552_s9, 9 }
   0x4   : > { %p113_p2 = pnand %p448_p0, %p112_p1 }
   0x5   : > { %p133_p3 = scmp.lt.s32.totalorder (!%p113_p2), %s444_s10, 7  ;;  %p452_p4 = scmp.ne.s32.totalorder (!%p113_p2), %s444_s10, 0 }
   0x6   : > { %116 = sbr.rel (%p113_p2) target bundleno = 318 (0x13e), region = 28 }
   0xd   : > { %s134_s11 = scalar_select %p133_p3, %s444_s10, 7 }
   0xe   : > { %145 = sbr.rel (%p452_p4) target bundleno = 21 (0x15), region = 32  ;;  %v554_v0 = vmov (!%p452_p4), 0.0  }
   0xf   : > { %s455_s12 = sshll.u32 %s134_s11, 5  ;;  %s451_s13 = sshll.u32 %s134_s11, 3  ;;  %146 = vst [vmem:[#allocation2] sm:$0xff] (!%p452_p4), %v554_v0  ;;  %147 = vst [vmem:[#allocation3] sm:$0xff] (!%p452_p4), %v554_v0 }
  0x10   : > { %s582_s16 = scalar_lea.vmem %s789_s0, %s455_s12  ;;  %s587_s19 = scalar_lea.vmem %s791_s2, %s451_s13 }
  0x15 PF: > { %v154_v1 = vld [vmem:[%s790_s1 + $0x8] sm:$0xff]  ;;  %v153_v3 = vld [vmem:[%s790_s1] sm:$0xff]  ;;  %v555_v8 = vmov 0.0   ;;  %v156_v20 = vld [vmem:[%s790_s1 + $0x18] sm:$0xff] }
  0x16   : > { %v158_v2 = vld [vmem:[%s790_s1 + $0x28] sm:$0xff]  ;;  %v157_v5 = vld [vmem:[%s790_s1 + $0x20] sm:$0xff]  ;;  %281 = vmatprep.mubr.f32.mxu0 %v555_v8  ;;  %352 = vmatprep.mubr.f32.mxu1 %v555_v8  ;;  %v160_v21 = vld [vmem:[%s790_s1 + $0x38] sm:$0xff] }
  0x17   : > { %v456_v4 = vpack.c.bf16 %v158_v2, %v154_v1  ;;  %v162_v6 = vld [vmem:[%s790_s1 + $0x48] sm:$0xff]  ;;  %v458_v9 = vpack.c.bf16 %v157_v5, %v153_v3  ;;  %v161_v11 = vld [vmem:[%s790_s1 + $0x40] sm:$0xff]  ;;  %v488_v23 = vpack.c.bf16 %v160_v21, %v156_v20  ;;  %v155_v24 = vld [vmem:[%s790_s1 + $0x10] sm:$0xff] }
  0x18   : > { %v166_v7 = vld [vmem:[%s790_s1 + $0x68] sm:$0xff]  ;;  %v165_v12 = vld [vmem:[%s790_s1 + $0x60] sm:$0xff]  ;;  %v159_v25 = vld [vmem:[%s790_s1 + $0x30] sm:$0xff] }
  0x19   : > { %v460_v10 = vpack.c.bf16 %v166_v7, %v162_v6  ;;  %v170_v13 = vld [vmem:[%s790_s1 + $0x88] sm:$0xff]  ;;  %457 = vmatprep.subr.bf16.mxu0 %v456_v4  ;;  %v462_v15 = vpack.c.bf16 %v165_v12, %v161_v11  ;;  %v169_v16 = vld [vmem:[%s790_s1 + $0x80] sm:$0xff]  ;;  %v490_v26 = vpack.c.bf16 %v159_v25, %v155_v24  ;;  %489 = vmatprep.subr.bf16.mxu1 %v488_v23  ;;  %v164_v28 = vld [vmem:[%s790_s1 + $0x58] sm:$0xff] }
  0x1a   : > { %v174_v14 = vld [vmem:[%s790_s1 + $0xa8] sm:$0xff]  ;;  %459 = vmatpush1.bf16.msra.mxu0 %v458_v9  ;;  %v173_v17 = vld [vmem:[%s790_s1 + $0xa0] sm:$0xff]  ;;  %v168_v29 = vld [vmem:[%s790_s1 + $0x78] sm:$0xff] }
  0x1b   : > { %461 = vmatprep.subr.bf16.mxu0 %v460_v10  ;;  %v464_v18 = vpack.c.bf16 %v174_v14, %v170_v13  ;;  %v178_v19 = vld [vmem:[%s790_s1 + $0xc8] sm:$0xff]  ;;  %v466_v27 = vpack.c.bf16 %v173_v17, %v169_v16  ;;  %v163_v30 = vld [vmem:[%s790_s1 + $0x50] sm:$0xff]  ;;  %v177_v32 = vld [vmem:[%s790_s1 + $0xc0] sm:$0xff]  ;;  %491 = vmatpush1.bf16.msra.mxu1 %v490_v26  ;;  %v492_v34 = vpack.c.bf16 %v168_v29, %v164_v28 }
  0x1c   : > { %v182_v22 = vld [vmem:[%s790_s1 + $0xe8] sm:$0xff]  ;;  %v181_v33 = vld [vmem:[%s790_s1 + $0xe0] sm:$0xff]  ;;  %v167_v35 = vld [vmem:[%s790_s1 + $0x70] sm:$0xff] }
  0x1d   : > { %v468_v31 = vpack.c.bf16 %v182_v22, %v178_v19  ;;  %v186_v36 = vld [vmem:[%s790_s1 + $0x108] sm:$0xff]  ;;  %v494_v38 = vpack.c.bf16 %v167_v35, %v163_v30  ;;  %v172_v39 = vld [vmem:[%s790_s1 + $0x98] sm:$0xff]  ;;  %493 = vmatprep.subr.bf16.mxu1 %v492_v34  ;;  %v171_v41 = vld [vmem:[%s790_s1 + $0x90] sm:$0xff]  ;;  %v470_v43 = vpack.c.bf16 %v181_v33, %v177_v32 }
  0x1e   : > { %463 = vmatpush1.bf16.msra.mxu0 %v462_v15  ;;  %v190_v37 = vld [vmem:[%s790_s1 + $0x128] sm:$0xff]  ;;  %v176_v40 = vld [vmem:[%s790_s1 + $0xb8] sm:$0xff]  ;;  %v175_v42 = vld [vmem:[%s790_s1 + $0xb0] sm:$0xff] }
  0x1f   : > { %465 = vmatprep.subr.bf16.mxu0 %v464_v18  ;;  %v185_v44 = vld [vmem:[%s790_s1 + $0x100] sm:$0xff]  ;;  %v496_v46 = vpack.c.bf16 %v176_v40, %v172_v39  ;;  %v472_v47 = vpack.c.bf16 %v190_v37, %v186_v36  ;;  %495 = vmatpush1.bf16.msra.mxu1 %v494_v38  ;;  %v194_v48 = vld [vmem:[%s790_s1 + $0x148] sm:$0xff]  ;;  %v498_v49 = vpack.c.bf16 %v175_v42, %v171_v41  ;;  %v180_v50 = vld [vmem:[%s790_s1 + $0xd8] sm:$0xff] }
  0x20   : > { %v189_v45 = vld [vmem:[%s790_s1 + $0x120] sm:$0xff]  ;;  %v184_v51 = vld [vmem:[%s790_s1 + $0xf8] sm:$0xff]  ;;  %v198_v52 = vld [vmem:[%s790_s1 + $0x168] sm:$0xff] }
  0x21   : > { %497 = vmatprep.subr.bf16.mxu1 %v496_v46  ;;  %v500_v53 = vpack.c.bf16 %v184_v51, %v180_v50  ;;  %v179_v54 = vld [vmem:[%s790_s1 + $0xd0] sm:$0xff]  ;;  %v474_v56 = vpack.c.bf16 %v189_v45, %v185_v44  ;;  %v188_v57 = vld [vmem:[%s790_s1 + $0x118] sm:$0xff]  ;;  %v476_v59 = vpack.c.bf16 %v198_v52, %v194_v48  ;;  %v193_v60 = vld [vmem:[%s790_s1 + $0x140] sm:$0xff] }
  0x22   : > { %467 = vmatpush1.bf16.msra.mxu0 %v466_v27  ;;  %v183_v55 = vld [vmem:[%s790_s1 + $0xf0] sm:$0xff]  ;;  %v192_v58 = vld [vmem:[%s790_s1 + $0x138] sm:$0xff]  ;;  %v197_v61 = vld [vmem:[%s790_s1 + $0x160] sm:$0xff] }
  0x23   : > { %469 = vmatprep.subr.bf16.mxu0 %v468_v31  ;;  %499 = vmatpush1.bf16.msra.mxu1 %v498_v49  ;;  %v202_v62 = vld [vmem:[%s790_s1 + $0x188] sm:$0xff]  ;;  %v502_v63 = vpack.c.bf16 %v183_v55, %v179_v54  ;;  %v504_v1 = vpack.c.bf16 %v192_v58, %v188_v57  ;;  %v187_v2 = vld [vmem:[%s790_s1 + $0x110] sm:$0xff]  ;;  %v196_v4 = vld [vmem:[%s790_s1 + $0x158] sm:$0xff]  ;;  %v478_v6 = vpack.c.bf16 %v197_v61, %v193_v60 }
  0x24   : > { %v206_v0 = vld [vmem:[%s790_s1 + $0x1a8] sm:$0xff]  ;;  %501 = vmatprep.subr.bf16.mxu1 %v500_v53  ;;  %v191_v3 = vld [vmem:[%s790_s1 + $0x130] sm:$0xff]  ;;  %v200_v5 = vld [vmem:[%s790_s1 + $0x178] sm:$0xff] }
  0x25   : > { %v480_v7 = vpack.c.bf16 %v206_v0, %v202_v62  ;;  %v201_v8 = vld [vmem:[%s790_s1 + $0x180] sm:$0xff]  ;;  %v210_v10 = vld [vmem:[%s790_s1 + $0x1c8] sm:$0xff]  ;;  %v506_v11 = vpack.c.bf16 %v191_v3, %v187_v2  ;;  %v508_v13 = vpack.c.bf16 %v200_v5, %v196_v4  ;;  %v195_v14 = vld [vmem:[%s790_s1 + $0x150] sm:$0xff] }
  0x26   : > { %471 = vmatpush1.bf16.msra.mxu0 %v470_v43  ;;  %v205_v9 = vld [vmem:[%s790_s1 + $0x1a0] sm:$0xff]  ;;  %v214_v12 = vld [vmem:[%s790_s1 + $0x1e8] sm:$0xff]  ;;  %v199_v15 = vld [vmem:[%s790_s1 + $0x170] sm:$0xff] }
  0x27   : > { %473 = vmatprep.subr.bf16.mxu0 %v472_v47  ;;  %503 = vmatpush1.bf16.msra.mxu1 %v502_v63  ;;  %v204_v16 = vld [vmem:[%s790_s1 + $0x198] sm:$0xff]  ;;  %v482_v18 = vpack.c.bf16 %v205_v9, %v201_v8  ;;  %v484_v19 = vpack.c.bf16 %v214_v12, %v210_v10  ;;  %v209_v20 = vld [vmem:[%s790_s1 + $0x1c0] sm:$0xff]  ;;  %v510_v22 = vpack.c.bf16 %v199_v15, %v195_v14  ;;  %v203_v24 = vld [vmem:[%s790_s1 + $0x190] sm:$0xff] }
  0x28   : > { %505 = vmatprep.subr.bf16.mxu1 %v504_v1  ;;  %v208_v17 = vld [vmem:[%s790_s1 + $0x1b8] sm:$0xff]  ;;  %v213_v21 = vld [vmem:[%s790_s1 + $0x1e0] sm:$0xff]  ;;  %v207_v25 = vld [vmem:[%s790_s1 + $0x1b0] sm:$0xff] }
  0x29   : > { %v512_v23 = vpack.c.bf16 %v208_v17, %v204_v16  ;;  %v212_v26 = vld [vmem:[%s790_s1 + $0x1d8] sm:$0xff]  ;;  %v486_v28 = vpack.c.bf16 %v213_v21, %v209_v20  ;;  %v514_v29 = vpack.c.bf16 %v207_v25, %v203_v24  ;;  %v211_v31 = vld [vmem:[%s790_s1 + $0x1d0] sm:$0xff]  ;;  %v152_v33 = vld [vmem:[#allocation2] sm:$0xff] }
  0x2a   : > { %475 = vmatpush1.bf16.msra.mxu0 %v474_v56  ;;  %v216_v27 = vld [vmem:[%s790_s1 + $0x1f8] sm:$0xff]  ;;  %v215_v32 = vld [vmem:[%s790_s1 + $0x1f0] sm:$0xff]  ;;  %v148_v35 = vld [vmem:[%s582_s16] sm:$0xff] }
  0x2b   : > { %477 = vmatprep.subr.bf16.mxu0 %v476_v59  ;;  %507 = vmatpush1.bf16.msra.mxu1 %v506_v11  ;;  %v516_v30 = vpack.c.bf16 %v216_v27, %v212_v26  ;;  %v518_v34 = vpack.c.bf16 %v215_v32, %v211_v31  ;;  %v149_v36 = vld [vmem:[%s582_s16 + $0x8] sm:$0xff]  ;;  %v151_v43 = vld [vmem:[%s582_s16 + $0x18] sm:$0xff]  ;;  %v150_v50 = vld [vmem:[%s582_s16 + $0x10] sm:$0xff] }
  0x2c   : > { %509 = vmatprep.subr.bf16.mxu1 %v508_v13  ;;  %v382_v59 = vld [vmem:[#allocation3] sm:$0xff] }
  0x2e   : > { %479 = vmatpush1.bf16.msra.mxu0 %v478_v6 }
  0x2f   : > { %481 = vmatprep.subr.bf16.mxu0 %v480_v7  ;;  %511 = vmatpush1.bf16.msra.mxu1 %v510_v22 }
  0x30   : > { %513 = vmatprep.subr.bf16.mxu1 %v512_v23 }
  0x32   : > { %483 = vmatpush1.bf16.msra.mxu0 %v482_v18 }
  0x33   : > { %485 = vmatprep.subr.bf16.mxu0 %v484_v19  ;;  %515 = vmatpush1.bf16.msra.mxu1 %v514_v29 }
  0x34   : > { %517 = vmatprep.subr.bf16.mxu1 %v516_v30 }
  0x36   : > { %487 = vmatpush1.bf16.msra.mxu0 %v486_v28 }
  0x37   : > { %519 = vmatpush1.bf16.msra.mxu1 %v518_v34 }
  0x39   : > { %282 = vmatmul.mubr.f32.vlgmr.msra.gmra.mrb[0].mxu0 %v152_v33 }
  0x3a   : > { %353 = vmatmul.mubr.f32.vlgmr.msra.gmra.mrb[0].mxu1 %v152_v33 }
 0x10c   : > { %v283_v37 = vpop.f32.mrb[0].mxu0 }
 0x10d   : > { %v359_v38 = vadd.f32 %v283_v37, %v148_v35  ;;  %v285_v39 = vpop.f32.mrb[1].mxu0  ;;  %v354_v45 = vpop.f32.mrb[0].mxu1 }
 0x10e   : > { %v360_v40 = vadd.f32 %v285_v39, %v149_v36  ;;  %v356_v47 = vpop.f32.mrb[1].mxu1  ;;  %v361_v52 = vadd.f32 %v354_v45, %v150_v50 }
 0x10f   : > { %v363_v41 = vsub.f32 0.0, %v359_v38  ;;  %v362_v48 = vadd.f32 %v356_v47, %v151_v43 }
 0x110   : > { %v369_v42 = vsub.f32 0.0, %v360_v40 }
 0x111   : > { %v364_v44 = vmul.f32 1.442695, %v363_v41  ;;  %v376_v49 = vsub.f32 0.0, %v362_v48 }
 0x112   : > { %v370_v46 = vmul.f32 1.442695, %v369_v42 }
 0x113   : > { %530 = vpow2.f32 %v364_v44  ;;  %v377_v51 = vmul.f32 1.442695, %v376_v49 }
 0x114   : > { %532 = vpow2.f32 %v370_v46 }
 0x115   : > { %534 = vpow2.f32 %v377_v51 }
 0x116   : > { %536 = vtanh.f32 %v361_v52 }
 0x11d   : > { %v531_v53 = vpop.eup %530 }
 0x11e   : > { %v533_v54 = vpop.eup %532  ;;  %v366_v55 = vadd.f32 1.0, %v531_v53 }
 0x11f   : > { %v372_v56 = vadd.f32 1.0, %v533_v54  ;;  %v535_v57 = vpop.eup %534 }
 0x120   : > { %538 = vrcp.f32 %v366_v55  ;;  %v537_v58 = vpop.eup %536  ;;  %v379_v61 = vadd.f32 1.0, %v535_v57 }
 0x121   : > { %540 = vrcp.f32 %v372_v56 }
 0x122   : > { %542 = vrcp.f32 %v379_v61 }
 0x12a   : > { %v539_v60 = vpop.eup %538 }
 0x12b   : > { %v541_v62 = vpop.eup %540  ;;  %v384_v63 = vmul.f32 %v539_v60, %v537_v58 }
 0x12c   : > { %v383_v0 = vmul.f32 %v541_v62, %v382_v59  ;;  %v543_v2 = vpop.eup %542 }
 0x12e   : > { %v385_v1 = vadd.f32 %v384_v63, %v383_v0 }
 0x130   : > { %544 = vtanh.f32 %v385_v1  ;;  %388 = vst [vmem:[#allocation3] sm:$0xff] %v385_v1 }
 0x13a   : > { %v545_v3 = vpop.eup %544 }
 0x13b   : > { %v387_v4 = vmul.f32 %v545_v3, %v543_v2 }
 0x13d   : > { %389 = vst [vmem:[#allocation2] sm:$0xff] %v387_v4  ;;  %390 = vst [vmem:[%s587_s19] sm:$0xff] %v387_v4 }
 0x13e PF: > { %s12_s9 = sadd.s32 1, %s552_s9  }
 0x13f   : > { %p9_p5 = scmp.ge.s32.totalorder %s12_s9, 10  }
 0x141   :  { %11 = sbr.rel (!%p9_p5) target bundleno = 1 (0x1), region = 62 }

</bundles_post_ra>
